<compile_context>
chip_gen: v7x
topology: tpu7x:2x2x1
jax: 0.10.0
libtpu: 0.0.40
codegen_flags: <defaults>
</compile_context>

<pallas_src>
import jax
import jax.numpy as jnp
from jax import lax
from jax.experimental import pallas as pl
from jax.experimental.pallas import tpu as pltpu

EPS = 1e-5


def _fused_kernel(x_ref, w_ref, gb1_ref, gb2_ref, o_ref):
    # x_ref  : (Cin, P)    f32  constant block (DMA'd once, VMEM-resident)
    # w_ref  : (TCO, Cin)  f32  per-block slice of the 1x1 conv weight
    # gb1_ref: (Cin, 2)    f32  [:,0]=gamma1, [:,1]=beta1 (constant block)
    # gb2_ref: (TCO, 2)    f32  [:,0]=gamma2, [:,1]=beta2 (per-block slice)
    # o_ref  : (TCO, P)    f32
    x = x_ref[...]
    inv_p = 1.0 / x.shape[1]                       # static Python float

    # ---- BatchNorm2d #1: single-pass stats, folded scale/shift ----
    s1 = jnp.sum(x, axis=1, keepdims=True)         # (Cin, 1)
    q1 = jnp.sum(x * x, axis=1, keepdims=True)     # (Cin, 1)
    mean1 = s1 * inv_p
    var1 = q1 * inv_p - mean1 * mean1              # biased variance
    gb1 = gb1_ref[...]
    scale1 = gb1[:, 0:1] * lax.rsqrt(var1 + EPS)   # (Cin, 1) -> EUP rsqrt
    shift1 = gb1[:, 1:2] - mean1 * scale1          # (Cin, 1)

    # ---- BN1 affine + ReLU (one broadcasted mul + add + max) ----
    y = jnp.maximum(x * scale1 + shift1, 0.0)      # (Cin, P)

    # ---- 1x1 conv slice on the MXU: (TCO, Cin) @ (Cin, P) -> (TCO, P) ----
    # f32 operands kept deliberately (see header note on precision).
    z = jnp.dot(w_ref[...], y, preferred_element_type=jnp.float32)

    # Stage z in the output buffer and read it back so no separate lane-padded
    # (TCO, P) VMEM temp stays live alongside the output block.
    o_ref[...] = z
    z = o_ref[...]

    # ---- BatchNorm2d #2 (per-channel stats only need this block's rows) ----
    s2 = jnp.sum(z, axis=1, keepdims=True)         # (TCO, 1)
    q2 = jnp.sum(z * z, axis=1, keepdims=True)     # (TCO, 1)
    mean2 = s2 * inv_p
    var2 = q2 * inv_p - mean2 * mean2
    gb2 = gb2_ref[...]
    scale2 = gb2[:, 0:1] * lax.rsqrt(var2 + EPS)
    shift2 = gb2[:, 1:2] - mean2 * scale2

    o_ref[...] = z * scale2 + shift2


def fused_bn_relu_conv_bn(x_nchw, conv_w, g1, b1, g2, b2):
    """x_nchw: (N, Cin, H, W); conv_w: (Cout, Cin, 1, 1); returns (N, Cout, H, W)."""
    N, Cin, H, W = x_nchw.shape
    Cout = conv_w.shape[0]
    P = N * H * W

    if N == 1:
        # Pure reshape: NCHW with N=1 is already (Cin, H*W) contiguous.
        x2d = x_nchw.reshape(Cin, P).astype(jnp.float32)
    else:
        # TODO(synk): for N > 1 this wrapper transpose is an extra HBM pass;
        # folding N into the grid with accumulated BN stats would remove it.
        x2d = jnp.transpose(x_nchw, (1, 0, 2, 3)).reshape(Cin, P).astype(jnp.float32)

    w2d = conv_w.reshape(Cout, Cin).astype(jnp.float32)      # free reshape
    gb1 = jnp.stack([g1, b1], axis=1).astype(jnp.float32)    # (Cin, 2)
    gb2 = jnp.stack([g2, b2], axis=1).astype(jnp.float32)    # (Cout, 2)

    tco = 128 if Cout % 128 == 0 else Cout
    grid = (Cout // tco,)

    flops = 2 * P * Cin * Cout + 8 * P * (Cin + Cout)
    bytes_accessed = 4 * (P * Cin + Cout * Cin + P * Cout + 2 * (Cin + Cout))

    out2d = pl.pallas_call(
        _fused_kernel,
        out_shape=jax.ShapeDtypeStruct((Cout, P), jnp.float32),
        grid_spec=pltpu.PrefetchScalarGridSpec(
            num_scalar_prefetch=0,
            grid=grid,
            in_specs=[
                pl.BlockSpec((Cin, P), lambda j: (0, 0)),     # x: resident, DMA'd once
                pl.BlockSpec((tco, Cin), lambda j: (j, 0)),   # weight: streamed per block
                pl.BlockSpec((Cin, 2), lambda j: (0, 0)),     # BN1 gamma/beta
                pl.BlockSpec((tco, 2), lambda j: (j, 0)),     # BN2 gamma/beta slice
            ],
            out_specs=pl.BlockSpec((tco, P), lambda j: (j, 0)),
        ),
        compiler_params=pltpu.CompilerParams(
            dimension_semantics=("parallel",),
            vmem_limit_bytes=32 * 1024 * 1024),
        cost_estimate=pl.CostEstimate(
            flops=flops,
            transcendentals=Cin + Cout,
            bytes_accessed=bytes_accessed),
    )(x2d, w2d, gb1, gb2)

    if N == 1:
        return out2d.reshape(1, Cout, H, W)                   # free reshape
    return jnp.transpose(out2d.reshape(Cout, N, H, W), (1, 0, 2, 3))


def _reference(x_nchw, conv_w, g1, b1, g2, b2):
    """Plain-JAX reference of the PyTorch training-mode forward."""
    def bn(x, g, b):
        mean = jnp.mean(x, axis=(0, 2, 3), keepdims=True)
        var = jnp.mean((x - mean) ** 2, axis=(0, 2, 3), keepdims=True)
        xhat = (x - mean) / jnp.sqrt(var + EPS)
        return xhat * g.reshape(1, -1, 1, 1) + b.reshape(1, -1, 1, 1)

    y = jnp.maximum(bn(x_nchw, g1, b1), 0.0)
    z = lax.conv_general_dilated(
        y, conv_w, window_strides=(1, 1), padding="VALID",
        dimension_numbers=("NCHW", "OIHW", "NCHW"))
    return bn(z, g2, b2)


if __name__ == "__main__":
    key = jax.random.PRNGKey(0)
    k_x, k_w, k_g1, k_b1, k_g2, k_b2 = jax.random.split(key, 6)

    N, Cin, H, W, Cout = 1, 256, 14, 14, 1024

    x = jax.random.normal(k_x, (N, Cin, H, W), dtype=jnp.float32)
    conv_w = jax.random.normal(k_w, (Cout, Cin, 1, 1), dtype=jnp.float32) * 0.05
    gamma1 = 1.0 + 0.1 * jax.random.normal(k_g1, (Cin,), dtype=jnp.float32)
    beta1 = 0.1 * jax.random.normal(k_b1, (Cin,), dtype=jnp.float32)
    gamma2 = 1.0 + 0.1 * jax.random.normal(k_g2, (Cout,), dtype=jnp.float32)
    beta2 = 0.1 * jax.random.normal(k_b2, (Cout,), dtype=jnp.float32)

    fused = jax.jit(fused_bn_relu_conv_bn)
    out = jax.block_until_ready(fused(x, conv_w, gamma1, beta1, gamma2, beta2))

    ref = jax.block_until_ready(_reference(x, conv_w, gamma1, beta1, gamma2, beta2))
    assert out.shape == (N, Cout, H, W), out.shape
    assert jnp.allclose(out, ref, atol=1e-3, rtol=1e-3), float(jnp.max(jnp.abs(out - ref)))

    print("KERNEL_OK")
</pallas_src>

<mosaic_0001>
module attributes {stable_mosaic.version = 11 : i64} {
  func.func @_fused_kernel(%arg0: i32, %arg1: memref<256x196xf32, #tpu.memory_space<vmem>>, %arg2: memref<128x256xf32, #tpu.memory_space<vmem>>, %arg3: memref<256x2xf32, #tpu.memory_space<vmem>>, %arg4: memref<128x2xf32, #tpu.memory_space<vmem>>, %arg5: memref<128x196xf32, #tpu.memory_space<vmem>>) attributes {dimension_semantics = [#tpu.dimension_semantics<parallel>], iteration_bounds = array<i64: 8>, scalar_prefetch = 0 : i64, scratch_operands = 0 : i64, tpu.core_type = #tpu.core_type<tc>, window_params = [{pipeline_mode = #tpu.pipeline_mode<synchronous>, transform_indices = @transform_0, window_bounds = array<i64: 256, 196>}, {transform_indices = @transform_1, window_bounds = array<i64: 128, 256>}, {pipeline_mode = #tpu.pipeline_mode<synchronous>, transform_indices = @transform_2, window_bounds = array<i64: 256, 2>}, {transform_indices = @transform_3, window_bounds = array<i64: 128, 2>}, {transform_indices = @transform_4, window_bounds = array<i64: 128, 196>}]} {
    %c0 = arith.constant 0 : index
    %c0_0 = arith.constant 0 : index
    %0 = vector.load %arg1[%c0, %c0_0] : memref<256x196xf32, #tpu.memory_space<vmem>>, vector<256x196xf32>
    %cst = arith.constant dense<0.000000e+00> : vector<256xf32>
    %1 = vector.multi_reduction <add>, %0, %cst [1] : vector<256x196xf32> to vector<256xf32>
    %2 = vector.shape_cast %1 : vector<256xf32> to vector<256x1xf32>
    %3 = arith.mulf %0, %0 : vector<256x196xf32>
    %cst_1 = arith.constant dense<0.000000e+00> : vector<256xf32>
    %4 = vector.multi_reduction <add>, %3, %cst_1 [1] : vector<256x196xf32> to vector<256xf32>
    %5 = vector.shape_cast %4 : vector<256xf32> to vector<256x1xf32>
    %cst_2 = arith.constant 0.00510204071 : f32
    %6 = vector.broadcast %cst_2 : f32 to vector<256x1xf32>
    %7 = arith.mulf %2, %6 : vector<256x1xf32>
    %cst_3 = arith.constant 0.00510204071 : f32
    %8 = vector.broadcast %cst_3 : f32 to vector<256x1xf32>
    %9 = arith.mulf %5, %8 : vector<256x1xf32>
    %10 = arith.mulf %7, %7 : vector<256x1xf32>
    %11 = arith.subf %9, %10 : vector<256x1xf32>
    %c0_4 = arith.constant 0 : index
    %c0_5 = arith.constant 0 : index
    %12 = vector.load %arg3[%c0_4, %c0_5] : memref<256x2xf32, #tpu.memory_space<vmem>>, vector<256x2xf32>
    %13 = vector.extract_strided_slice %12 {offsets = [0, 0], sizes = [256, 1], strides = [1, 1]} : vector<256x2xf32> to vector<256x1xf32>
    %cst_6 = arith.constant 9.99999974E-6 : f32
    %14 = vector.broadcast %cst_6 : f32 to vector<256x1xf32>
    %15 = arith.addf %11, %14 : vector<256x1xf32>
    %16 = math.rsqrt %15 : vector<256x1xf32>
    %17 = arith.mulf %13, %16 : vector<256x1xf32>
    %18 = vector.extract_strided_slice %12 {offsets = [0, 1], sizes = [256, 1], strides = [1, 1]} : vector<256x2xf32> to vector<256x1xf32>
    %19 = arith.mulf %7, %17 : vector<256x1xf32>
    %20 = arith.subf %18, %19 : vector<256x1xf32>
    %21 = vector.broadcast %17 : vector<256x1xf32> to vector<256x196xf32>
    %22 = arith.mulf %0, %21 : vector<256x196xf32>
    %23 = vector.broadcast %20 : vector<256x1xf32> to vector<256x196xf32>
    %24 = arith.addf %22, %23 : vector<256x196xf32>
    %cst_7 = arith.constant 0.000000e+00 : f32
    %25 = vector.broadcast %cst_7 : f32 to vector<256x196xf32>
    %26 = arith.maximumf %24, %25 : vector<256x196xf32>
    %c0_8 = arith.constant 0 : index
    %c0_9 = arith.constant 0 : index
    %27 = vector.load %arg2[%c0_8, %c0_9] : memref<128x256xf32, #tpu.memory_space<vmem>>, vector<128x256xf32>
    %cst_10 = arith.constant dense<0.000000e+00> : vector<128x196xf32>
    %28 = tpu.matmul %27, %26, %cst_10 {dimension_numbers = #tpu.dot_dimension_numbers<[1], [0], [0], [1], [0, 0, 1, 1], [], []>} : vector<128x256xf32>, vector<256x196xf32>, vector<128x196xf32> -> vector<128x196xf32>
    %c0_11 = arith.constant 0 : index
    %c0_12 = arith.constant 0 : index
    %29 = vector.load %arg5[%c0_11, %c0_12] : memref<128x196xf32, #tpu.memory_space<vmem>>, vector<128x196xf32>
    tpu.vector_store %arg5[%c0_11, %c0_12], %28 {strides = array<i32>} : memref<128x196xf32, #tpu.memory_space<vmem>>, vector<128x196xf32>,
    %c0_13 = arith.constant 0 : index
    %c0_14 = arith.constant 0 : index
    %30 = vector.load %arg5[%c0_13, %c0_14] : memref<128x196xf32, #tpu.memory_space<vmem>>, vector<128x196xf32>
    %cst_15 = arith.constant dense<0.000000e+00> : vector<128xf32>
    %31 = vector.multi_reduction <add>, %30, %cst_15 [1] : vector<128x196xf32> to vector<128xf32>
    %32 = vector.shape_cast %31 : vector<128xf32> to vector<128x1xf32>
    %33 = arith.mulf %30, %30 : vector<128x196xf32>
    %cst_16 = arith.constant dense<0.000000e+00> : vector<128xf32>
    %34 = vector.multi_reduction <add>, %33, %cst_16 [1] : vector<128x196xf32> to vector<128xf32>
    %35 = vector.shape_cast %34 : vector<128xf32> to vector<128x1xf32>
    %cst_17 = arith.constant 0.00510204071 : f32
    %36 = vector.broadcast %cst_17 : f32 to vector<128x1xf32>
    %37 = arith.mulf %32, %36 : vector<128x1xf32>
    %cst_18 = arith.constant 0.00510204071 : f32
    %38 = vector.broadcast %cst_18 : f32 to vector<128x1xf32>
    %39 = arith.mulf %35, %38 : vector<128x1xf32>
    %40 = arith.mulf %37, %37 : vector<128x1xf32>
    %41 = arith.subf %39, %40 : vector<128x1xf32>
    %c0_19 = arith.constant 0 : index
    %c0_20 = arith.constant 0 : index
    %42 = vector.load %arg4[%c0_19, %c0_20] : memref<128x2xf32, #tpu.memory_space<vmem>>, vector<128x2xf32>
    %43 = vector.extract_strided_slice %42 {offsets = [0, 0], sizes = [128, 1], strides = [1, 1]} : vector<128x2xf32> to vector<128x1xf32>
    %cst_21 = arith.constant 9.99999974E-6 : f32
    %44 = vector.broadcast %cst_21 : f32 to vector<128x1xf32>
    %45 = arith.addf %41, %44 : vector<128x1xf32>
    %46 = math.rsqrt %45 : vector<128x1xf32>
    %47 = arith.mulf %43, %46 : vector<128x1xf32>
    %48 = vector.extract_strided_slice %42 {offsets = [0, 1], sizes = [128, 1], strides = [1, 1]} : vector<128x2xf32> to vector<128x1xf32>
    %49 = arith.mulf %37, %47 : vector<128x1xf32>
    %50 = arith.subf %48, %49 : vector<128x1xf32>
    %51 = vector.broadcast %47 : vector<128x1xf32> to vector<128x196xf32>
    %52 = arith.mulf %30, %51 : vector<128x196xf32>
    %53 = vector.broadcast %50 : vector<128x1xf32> to vector<128x196xf32>
    %54 = arith.addf %52, %53 : vector<128x196xf32>
    %c0_22 = arith.constant 0 : index
    %c0_23 = arith.constant 0 : index
    %55 = vector.load %arg5[%c0_22, %c0_23] : memref<128x196xf32, #tpu.memory_space<vmem>>, vector<128x196xf32>
    tpu.vector_store %arg5[%c0_22, %c0_23], %54 {strides = array<i32>} : memref<128x196xf32, #tpu.memory_space<vmem>>, vector<128x196xf32>,
    return
  }
  func.func @transform_0(%arg0: i32) -> (i32, i32) {
    %c0_i32 = arith.constant 0 : i32
    %c0_i32_0 = arith.constant 0 : i32
    %c0_i32_1 = arith.constant 0 : i32
    return %c0_i32, %c0_i32_0 : i32, i32
  }
  func.func @transform_1(%arg0: i32) -> (i32, i32) {
    %c0_i32 = arith.constant 0 : i32
    %c0_i32_0 = arith.constant 0 : i32
    return %arg0, %c0_i32 : i32, i32
  }
  func.func @transform_2(%arg0: i32) -> (i32, i32) {
    %c0_i32 = arith.constant 0 : i32
    %c0_i32_0 = arith.constant 0 : i32
    %c0_i32_1 = arith.constant 0 : i32
    return %c0_i32, %c0_i32_0 : i32, i32
  }
  func.func @transform_3(%arg0: i32) -> (i32, i32) {
    %c0_i32 = arith.constant 0 : i32
    %c0_i32_0 = arith.constant 0 : i32
    return %arg0, %c0_i32 : i32, i32
  }
  func.func @transform_4(%arg0: i32) -> (i32, i32) {
    %c0_i32 = arith.constant 0 : i32
    %c0_i32_0 = arith.constant 0 : i32
    return %arg0, %c0_i32 : i32, i32
  }
}

</mosaic_0001>

<bundles_post_ra>
// kernel: fused_bn_relu_conv_bn.1
= control target key start
LH: loop header
LB: loop body
LE: loop exit
PB: predicated region body
PF: predicated region fallthrough
CT: control target
= control target key end

     0   :  { %s2884_s15 = smov 0   ;;  %s4546_s0 = inlined_call_operand.vmem [shape: f32[256,196], index: 0, kind: input, shape index: {}]   ;;  %s4547_s1 = inlined_call_operand.vmem [shape: f32[1024,256], index: 1, kind: input, shape index: {}]   ;;  %s4548_s2 = inlined_call_operand.vmem [shape: f32[256,2], index: 2, kind: input, shape index: {}]   ;;  %s4549_s3 = inlined_call_operand.vmem [shape: f32[1024,2], index: 3, kind: input, shape index: {}]   ;;  %s4550_s4 = inlined_call_operand.vmem [shape: f32[1024,196], index: 4, kind: output, shape index: {}]  }
   0x1 LB: > { %s2540_s16 = sadd.s32 4294967295, %s2854_s15   ;;  %p2544_p0 = scmp.ge.s32.totalorder %s2854_s15, 1  ;;  %s2854_s15 = sphi %s2884_s15, %s14_s15  }
   0x2   : > { %p175_p1 = scmp.lt.s32.totalorder %s2854_s15, 9 }
   0x4   : > { %p176_p2 = pnand %p2544_p0, %p175_p1 }
   0x6   : > { %179 = sbr.rel (%p176_p2) target bundleno = 1317 (0x525), region = 36 }
   0xd   : > { %v228_v0 = vld [vmem:[%s4546_s0] sm:$0xff]  ;;  %v229_v1 = vld [vmem:[%s4546_s0 + $0x8] sm:$0xff]  ;;  %vm292_vm0 = vcmask 556032   ;;  %v230_v2 = vld [vmem:[%s4546_s0 + $0x10] sm:$0xff]  ;;  %s2857_s29 = smov 1   ;;  %s2545_s28 = sshll.u32 %s2540_s16, 4 }
   0xe   : > { %v293_v3 = vsel %vm292_vm0, %v229_v1, 0.0  ;;  %v421_v4 = vmul.f32 %v228_v0, %v228_v0  ;;  %v422_v5 = vmul.f32 %v229_v1, %v229_v1  ;;  %v231_v6 = vld [vmem:[%s4546_s0 + $0x18] sm:$0xff]  ;;  %v423_v9 = vmul.f32 %v230_v2, %v230_v2  ;;  %v233_v11 = vld [vmem:[%s4546_s0 + $0x28] sm:$0xff]  ;;  %v232_v17 = vld [vmem:[%s4546_s0 + $0x20] sm:$0xff]  ;;  %p209_p3 = scmp.lt.s32.totalorder %s2545_s28, 127 }
   0xf   : > { %v294_v7 = vadd.f32 %v293_v3, %v228_v0  ;;  %v297_v8 = vsel %vm292_vm0, %v231_v6, 0.0  ;;  %v424_v10 = vmul.f32 %v231_v6, %v231_v6  ;;  %v235_v16 = vld [vmem:[%s4546_s0 + $0x38] sm:$0xff]  ;;  %v301_v18 = vsel %vm292_vm0, %v233_v11, 0.0  ;;  %v234_v21 = vld [vmem:[%s4546_s0 + $0x30] sm:$0xff]  ;;  %v237_v29 = vld [vmem:[%s4546_s0 + $0x48] sm:$0xff] }
  0x10   : > { %v485_v12 = vsel %vm292_vm0, %v422_v5, 0.0  ;;  %v298_v14 = vadd.f32 %v297_v8, %v230_v2  ;;  %v426_v19 = vmul.f32 %v233_v11, %v233_v11  ;;  %v305_v22 = vsel %vm292_vm0, %v235_v16, 0.0  ;;  %v239_v32 = vld [vmem:[%s4546_s0 + $0x58] sm:$0xff]  ;;  %v236_v33 = vld [vmem:[%s4546_s0 + $0x40] sm:$0xff]  ;;  %v238_v37 = vld [vmem:[%s4546_s0 + $0x50] sm:$0xff]  ;;  %s4627_s28 = smov (!%p209_p3, %s2545_s28), 127 }
  0x11   : > { %295 = vadd.xlane.f32.xlu0 %v294_v7  ;;  %v486_v13 = vadd.f32 %v485_v12, %v421_v4  ;;  %v489_v15 = vsel %vm292_vm0, %v424_v10, 0.0  ;;  %v428_v23 = vmul.f32 %v235_v16, %v235_v16  ;;  %v302_v24 = vadd.f32 %v301_v18, %v232_v17  ;;  %v241_v45 = vld [vmem:[%s4546_s0 + $0x68] sm:$0xff]  ;;  %v243_v48 = vld [vmem:[%s4546_s0 + $0x78] sm:$0xff]  ;;  %v240_v49 = vld [vmem:[%s4546_s0 + $0x60] sm:$0xff]  ;;  %s2555_s11 = sshll.u32 %s4627_s28, 4 }
  0x12   : > { %v490_v20 = vadd.f32 %v489_v15, %v423_v9  ;;  %v425_v25 = vmul.f32 %v232_v17, %v232_v17  ;;  %v493_v26 = vsel %vm292_vm0, %v426_v19, 0.0  ;;  %v306_v27 = vadd.f32 %v305_v22, %v234_v21  ;;  %v242_v53 = vld [vmem:[%s4546_s0 + $0x70] sm:$0xff]  ;;  %v245_v61 = vld [vmem:[%s4546_s0 + $0x88] sm:$0xff]  ;;  %v247_v0 = vld [vmem:[%s4546_s0 + $0x98] sm:$0xff]  ;;  %s3748_s14 = scalar_lea.vmem %s4547_s1, %s2555_s11  ;;  %s3993_s26 = scalar_lea.vmem %s4550_s4, %s2555_s11 }
  0x13   : > { %487 = vadd.xlane.f32.xlu1 %v486_v13  ;;  %v427_v28 = vmul.f32 %v234_v21, %v234_v21  ;;  %v497_v30 = vsel %vm292_vm0, %v428_v23, 0.0  ;;  %v309_v34 = vsel %vm292_vm0, %v237_v29, 0.0  ;;  %v430_v35 = vmul.f32 %v237_v29, %v237_v29  ;;  %v244_v1 = vld [vmem:[%s4546_s0 + $0x80] sm:$0xff]  ;;  %v246_v5 = vld [vmem:[%s4546_s0 + $0x90] sm:$0xff]  ;;  %v249_v13 = vld [vmem:[%s4546_s0 + $0xa8] sm:$0xff]  ;;  %s2549_s11 = sshll.u32 %s4627_s28, 3 }
  0x14   : > { %v494_v31 = vadd.f32 %v493_v26, %v425_v25  ;;  %v313_v38 = vsel %vm292_vm0, %v239_v32, 0.0  ;;  %v432_v39 = vmul.f32 %v239_v32, %v239_v32  ;;  %v310_v40 = vadd.f32 %v309_v34, %v236_v33  ;;  %v251_v16 = vld [vmem:[%s4546_s0 + $0xb8] sm:$0xff]  ;;  %v248_v17 = vld [vmem:[%s4546_s0 + $0xa0] sm:$0xff]  ;;  %v250_v21 = vld [vmem:[%s4546_s0 + $0xb0] sm:$0xff]  ;;  %s4251_s30 = scalar_lea.vmem %s4549_s3, %s2549_s11 }
  0x15   : > { %299 = vadd.xlane.f32.xlu0 %v298_v14  ;;  %v498_v36 = vadd.f32 %v497_v30, %v427_v28  ;;  %v429_v41 = vmul.f32 %v236_v33, %v236_v33  ;;  %v501_v42 = vsel %vm292_vm0, %v430_v35, 0.0  ;;  %v314_v43 = vadd.f32 %v313_v38, %v238_v37  ;;  %v253_v29 = vld [vmem:[%s4546_s0 + $0xc8] sm:$0xff]  ;;  %v255_v32 = vld [vmem:[%s4546_s0 + $0xd8] sm:$0xff]  ;;  %v252_v33 = vld [vmem:[%s4546_s0 + $0xc0] sm:$0xff] }
  0x16   : > { %v431_v44 = vmul.f32 %v238_v37, %v238_v37  ;;  %v505_v46 = vsel %vm292_vm0, %v432_v39, 0.0  ;;  %v317_v50 = vsel %vm292_vm0, %v241_v45, 0.0  ;;  %v434_v51 = vmul.f32 %v241_v45, %v241_v45  ;;  %v254_v37 = vld [vmem:[%s4546_s0 + $0xd0] sm:$0xff]  ;;  %v257_v45 = vld [vmem:[%s4546_s0 + $0xe8] sm:$0xff] }
  0x17   : > { %491 = vadd.xlane.f32.xlu1 %v490_v20  ;;  %v502_v47 = vadd.f32 %v501_v42, %v429_v41  ;;  %v321_v54 = vsel %vm292_vm0, %v243_v48, 0.0  ;;  %v436_v55 = vmul.f32 %v243_v48, %v243_v48  ;;  %v318_v56 = vadd.f32 %v317_v50, %v240_v49  ;;  %v259_v48 = vld [vmem:[%s4546_s0 + $0xf8] sm:$0xff] }
  0x18   : > { %v506_v52 = vadd.f32 %v505_v46, %v431_v44  ;;  %v433_v57 = vmul.f32 %v240_v49, %v240_v49  ;;  %v509_v58 = vsel %vm292_vm0, %v434_v51, 0.0  ;;  %v322_v59 = vadd.f32 %v321_v54, %v242_v53  ;;  %v256_v49 = vld [vmem:[%s4546_s0 + $0xe0] sm:$0xff] }
  0x19   : > { %303 = vadd.xlane.f32.xlu0 %v302_v24  ;;  %v435_v60 = vmul.f32 %v242_v53, %v242_v53  ;;  %v513_v62 = vsel %vm292_vm0, %v436_v55, 0.0  ;;  %v325_v2 = vsel %vm292_vm0, %v245_v61, 0.0  ;;  %v438_v3 = vmul.f32 %v245_v61, %v245_v61  ;;  %v258_v53 = vld [vmem:[%s4546_s0 + $0xf0] sm:$0xff]  ;;  %v261_v61 = vld [vmem:[%s4546_s0 + $0x108] sm:$0xff] }
  0x1a   : > { %v510_v63 = vadd.f32 %v509_v58, %v433_v57  ;;  %v329_v6 = vsel %vm292_vm0, %v247_v0, 0.0  ;;  %v440_v7 = vmul.f32 %v247_v0, %v247_v0  ;;  %v326_v8 = vadd.f32 %v325_v2, %v244_v1  ;;  %v263_v0 = vld [vmem:[%s4546_s0 + $0x118] sm:$0xff] }
  0x1b   : > { %307 = vadd.xlane.f32.xlu1 %v306_v27  ;;  %v514_v4 = vadd.f32 %v513_v62, %v435_v60  ;;  %v437_v9 = vmul.f32 %v244_v1, %v244_v1  ;;  %v517_v10 = vsel %vm292_vm0, %v438_v3, 0.0  ;;  %v330_v11 = vadd.f32 %v329_v6, %v246_v5  ;;  %v260_v1 = vld [vmem:[%s4546_s0 + $0x100] sm:$0xff] }
  0x1c   : > { %v439_v12 = vmul.f32 %v246_v5, %v246_v5  ;;  %v521_v14 = vsel %vm292_vm0, %v440_v7, 0.0  ;;  %v333_v18 = vsel %vm292_vm0, %v249_v13, 0.0  ;;  %v442_v19 = vmul.f32 %v249_v13, %v249_v13  ;;  %v262_v5 = vld [vmem:[%s4546_s0 + $0x110] sm:$0xff]  ;;  %v265_v13 = vld [vmem:[%s4546_s0 + $0x128] sm:$0xff] }
  0x1d   : > { %495 = vadd.xlane.f32.xlu0 %v494_v31  ;;  %v518_v15 = vadd.f32 %v517_v10, %v437_v9  ;;  %v337_v22 = vsel %vm292_vm0, %v251_v16, 0.0  ;;  %v444_v23 = vmul.f32 %v251_v16, %v251_v16  ;;  %v334_v24 = vadd.f32 %v333_v18, %v248_v17  ;;  %v267_v16 = vld [vmem:[%s4546_s0 + $0x138] sm:$0xff] }
  0x1e   : > { %v522_v20 = vadd.f32 %v521_v14, %v439_v12  ;;  %v441_v25 = vmul.f32 %v248_v17, %v248_v17  ;;  %v525_v26 = vsel %vm292_vm0, %v442_v19, 0.0  ;;  %v338_v27 = vadd.f32 %v337_v22, %v250_v21  ;;  %v264_v17 = vld [vmem:[%s4546_s0 + $0x120] sm:$0xff] }
  0x1f   : > { %499 = vadd.xlane.f32.xlu1 %v498_v36  ;;  %v443_v28 = vmul.f32 %v250_v21, %v250_v21  ;;  %v529_v30 = vsel %vm292_vm0, %v444_v23, 0.0  ;;  %v341_v34 = vsel %vm292_vm0, %v253_v29, 0.0  ;;  %v446_v35 = vmul.f32 %v253_v29, %v253_v29  ;;  %v266_v21 = vld [vmem:[%s4546_s0 + $0x130] sm:$0xff]  ;;  %v269_v29 = vld [vmem:[%s4546_s0 + $0x148] sm:$0xff] }
  0x20   : > { %v526_v31 = vadd.f32 %v525_v26, %v441_v25  ;;  %v345_v38 = vsel %vm292_vm0, %v255_v32, 0.0  ;;  %v448_v39 = vmul.f32 %v255_v32, %v255_v32  ;;  %v445_v41 = vmul.f32 %v252_v33, %v252_v33  ;;  %v271_v32 = vld [vmem:[%s4546_s0 + $0x158] sm:$0xff] }
  0x21   : > { %311 = vadd.xlane.f32.xlu0 %v310_v40  ;;  %v530_v36 = vadd.f32 %v529_v30, %v443_v28  ;;  %v342_v40 = vadd.f32 %v341_v34, %v252_v33  ;;  %v533_v42 = vsel %vm292_vm0, %v446_v35, 0.0  ;;  %v447_v44 = vmul.f32 %v254_v37, %v254_v37  ;;  %v268_v33 = vld [vmem:[%s4546_s0 + $0x140] sm:$0xff] }
  0x22   : > { %v537_v46 = vsel %vm292_vm0, %v448_v39, 0.0  ;;  %v349_v50 = vsel %vm292_vm0, %v257_v45, 0.0  ;;  %v450_v51 = vmul.f32 %v257_v45, %v257_v45  ;;  %v353_v54 = vsel %vm292_vm0, %v259_v48, 0.0  ;;  %v273_v45 = vld [vmem:[%s4546_s0 + $0x168] sm:$0xff] }
  0x23   : > { %315 = vadd.xlane.f32.xlu1 %v314_v43  ;;  %v346_v43 = vadd.f32 %v345_v38, %v254_v37  ;;  %v452_v55 = vmul.f32 %v259_v48, %v259_v48  ;;  %v449_v57 = vmul.f32 %v256_v49, %v256_v49  ;;  %v451_v60 = vmul.f32 %v258_v53, %v258_v53  ;;  %v270_v37 = vld [vmem:[%s4546_s0 + $0x150] sm:$0xff]  ;;  %v275_v48 = vld [vmem:[%s4546_s0 + $0x178] sm:$0xff] }
  0x24   : > { %v541_v58 = vsel %vm292_vm0, %v450_v51, 0.0  ;;  %v357_v2 = vsel %vm292_vm0, %v261_v61, 0.0  ;;  %v454_v3 = vmul.f32 %v261_v61, %v261_v61  ;;  %v361_v6 = vsel %vm292_vm0, %v263_v0, 0.0  ;;  %v277_v61 = vld [vmem:[%s4546_s0 + $0x188] sm:$0xff] }
  0x25   : > { %503 = vadd.xlane.f32.xlu0 %v502_v47  ;;  %v534_v47 = vadd.f32 %v533_v42, %v445_v41  ;;  %v545_v62 = vsel %vm292_vm0, %v452_v55, 0.0  ;;  %v456_v7 = vmul.f32 %v263_v0, %v263_v0  ;;  %v453_v9 = vmul.f32 %v260_v1, %v260_v1  ;;  %v279_v0 = vld [vmem:[%s4546_s0 + $0x198] sm:$0xff] }
  0x26   : > { %v549_v10 = vsel %vm292_vm0, %v454_v3, 0.0  ;;  %v455_v12 = vmul.f32 %v262_v5, %v262_v5  ;;  %v365_v18 = vsel %vm292_vm0, %v265_v13, 0.0  ;;  %v458_v19 = vmul.f32 %v265_v13, %v265_v13  ;;  %v281_v13 = vld [vmem:[%s4546_s0 + $0x1a8] sm:$0xff] }
  0x27   : > { %507 = vadd.xlane.f32.xlu1 %v506_v52  ;;  %v538_v52 = vadd.f32 %v537_v46, %v447_v44  ;;  %v553_v14 = vsel %vm292_vm0, %v456_v7, 0.0  ;;  %v369_v22 = vsel %vm292_vm0, %v267_v16, 0.0  ;;  %v460_v23 = vmul.f32 %v267_v16, %v267_v16  ;;  %v283_v16 = vld [vmem:[%s4546_s0 + $0x1b8] sm:$0xff] }
  0x28   : > { %v457_v25 = vmul.f32 %v264_v17, %v264_v17  ;;  %v557_v26 = vsel %vm292_vm0, %v458_v19, 0.0  ;;  %v459_v28 = vmul.f32 %v266_v21, %v266_v21  ;;  %v373_v34 = vsel %vm292_vm0, %v269_v29, 0.0 }
  0x29   : > { %319 = vadd.xlane.f32.xlu0 %v318_v56  ;;  %v350_v56 = vadd.f32 %v349_v50, %v256_v49  ;;  %v561_v30 = vsel %vm292_vm0, %v460_v23, 0.0  ;;  %v462_v35 = vmul.f32 %v269_v29, %v269_v29  ;;  %v377_v38 = vsel %vm292_vm0, %v271_v32, 0.0  ;;  %v272_v49 = vld [vmem:[%s4546_s0 + $0x160] sm:$0xff]  ;;  %v285_v29 = vld [vmem:[%s4546_s0 + $0x1c8] sm:$0xff] }
  0x2a   : > { %v464_v39 = vmul.f32 %v271_v32, %v271_v32  ;;  %v461_v41 = vmul.f32 %v268_v33, %v268_v33  ;;  %v463_v44 = vmul.f32 %v270_v37, %v270_v37  ;;  %v381_v50 = vsel %vm292_vm0, %v273_v45, 0.0  ;;  %v287_v32 = vld [vmem:[%s4546_s0 + $0x1d8] sm:$0xff] }
  0x2b   : > { %323 = vadd.xlane.f32.xlu1 %v322_v59  ;;  %v354_v59 = vadd.f32 %v353_v54, %v258_v53  ;;  %v565_v42 = vsel %vm292_vm0, %v462_v35, 0.0  ;;  %v466_v51 = vmul.f32 %v273_v45, %v273_v45  ;;  %v274_v53 = vld [vmem:[%s4546_s0 + $0x170] sm:$0xff]  ;;  %v385_v54 = vsel %vm292_vm0, %v275_v48, 0.0  ;;  %v289_v45 = vld [vmem:[%s4546_s0 + $0x1e8] sm:$0xff] }
  0x2c   : > { %v569_v46 = vsel %vm292_vm0, %v464_v39, 0.0  ;;  %v468_v55 = vmul.f32 %v275_v48, %v275_v48  ;;  %v470_v3 = vmul.f32 %v277_v61, %v277_v61  ;;  %v472_v7 = vmul.f32 %v279_v0, %v279_v0  ;;  %v291_v48 = vld [vmem:[%s4546_s0 + $0x1f8] sm:$0xff] }
  0x2d   : > { %511 = vadd.xlane.f32.xlu0 %v510_v63  ;;  %v542_v63 = vadd.f32 %v541_v58, %v449_v57  ;;  %v465_v57 = vmul.f32 %v272_v49, %v272_v49  ;;  %v573_v58 = vsel %vm292_vm0, %v466_v51, 0.0  ;;  %v474_v19 = vmul.f32 %v281_v13, %v281_v13 }
  0x2e   : > { %v476_v23 = vmul.f32 %v283_v16, %v283_v16  ;;  %v478_v35 = vmul.f32 %v285_v29, %v285_v29  ;;  %v480_v39 = vmul.f32 %v287_v32, %v287_v32  ;;  %v482_v51 = vmul.f32 %v289_v45, %v289_v45 }
  0x2f   : > { %515 = vadd.xlane.f32.xlu1 %v514_v4  ;;  %v546_v4 = vadd.f32 %v545_v62, %v451_v60  ;;  %v467_v60 = vmul.f32 %v274_v53, %v274_v53  ;;  %v577_v62 = vsel %vm292_vm0, %v468_v55, 0.0  ;;  %v484_v55 = vmul.f32 %v291_v48, %v291_v48 }
  0x31   : > { %327 = vadd.xlane.f32.xlu0 %v326_v8  ;;  %v358_v8 = vadd.f32 %v357_v2, %v260_v1  ;;  %v276_v1 = vld [vmem:[%s4546_s0 + $0x180] sm:$0xff]  ;;  %v389_v2 = vsel %vm292_vm0, %v277_v61, 0.0  ;;  %v609_v61 = vsel %vm292_vm0, %v484_v55, 0.0 }
  0x33   : > { %331 = vadd.xlane.f32.xlu1 %v330_v11  ;;  %v362_v11 = vadd.f32 %v361_v6, %v262_v5  ;;  %v278_v5 = vld [vmem:[%s4546_s0 + $0x190] sm:$0xff]  ;;  %v393_v6 = vsel %vm292_vm0, %v279_v0, 0.0 }
  0x35   : > { %519 = vadd.xlane.f32.xlu0 %v518_v15  ;;  %v550_v15 = vadd.f32 %v549_v10, %v453_v9  ;;  %v469_v9 = vmul.f32 %v276_v1, %v276_v1  ;;  %v581_v10 = vsel %vm292_vm0, %v470_v3, 0.0 }
  0x37   : > { %523 = vadd.xlane.f32.xlu1 %v522_v20  ;;  %v554_v20 = vadd.f32 %v553_v14, %v455_v12  ;;  %v471_v12 = vmul.f32 %v278_v5, %v278_v5  ;;  %v585_v14 = vsel %vm292_vm0, %v472_v7, 0.0 }
  0x39   : > { %335 = vadd.xlane.f32.xlu0 %v334_v24  ;;  %v366_v24 = vadd.f32 %v365_v18, %v264_v17  ;;  %v280_v17 = vld [vmem:[%s4546_s0 + $0x1a0] sm:$0xff]  ;;  %v397_v18 = vsel %vm292_vm0, %v281_v13, 0.0 }
  0x3b   : > { %339 = vadd.xlane.f32.xlu1 %v338_v27  ;;  %v370_v27 = vadd.f32 %v369_v22, %v266_v21  ;;  %v282_v21 = vld [vmem:[%s4546_s0 + $0x1b0] sm:$0xff]  ;;  %v401_v22 = vsel %vm292_vm0, %v283_v16, 0.0 }
  0x3d   : > { %527 = vadd.xlane.f32.xlu0 %v526_v31  ;;  %v558_v31 = vadd.f32 %v557_v26, %v457_v25  ;;  %v473_v25 = vmul.f32 %v280_v17, %v280_v17  ;;  %v589_v26 = vsel %vm292_vm0, %v474_v19, 0.0 }
  0x3f   : > { %531 = vadd.xlane.f32.xlu1 %v530_v36  ;;  %v562_v36 = vadd.f32 %v561_v30, %v459_v28  ;;  %v475_v28 = vmul.f32 %v282_v21, %v282_v21  ;;  %v593_v30 = vsel %vm292_vm0, %v476_v23, 0.0 }
  0x41   : > { %343 = vadd.xlane.f32.xlu0 %v342_v40  ;;  %v374_v40 = vadd.f32 %v373_v34, %v268_v33  ;;  %v284_v33 = vld [vmem:[%s4546_s0 + $0x1c0] sm:$0xff]  ;;  %v405_v34 = vsel %vm292_vm0, %v285_v29, 0.0 }
  0x43   : > { %347 = vadd.xlane.f32.xlu1 %v346_v43  ;;  %v378_v43 = vadd.f32 %v377_v38, %v270_v37  ;;  %v286_v37 = vld [vmem:[%s4546_s0 + $0x1d0] sm:$0xff]  ;;  %v409_v38 = vsel %vm292_vm0, %v287_v32, 0.0 }
  0x45   : > { %535 = vadd.xlane.f32.xlu0 %v534_v47  ;;  %v566_v47 = vadd.f32 %v565_v42, %v461_v41  ;;  %v477_v41 = vmul.f32 %v284_v33, %v284_v33  ;;  %v597_v42 = vsel %vm292_vm0, %v478_v35, 0.0 }
  0x47   : > { %539 = vadd.xlane.f32.xlu1 %v538_v52  ;;  %v570_v52 = vadd.f32 %v569_v46, %v463_v44  ;;  %v479_v44 = vmul.f32 %v286_v37, %v286_v37  ;;  %v601_v46 = vsel %vm292_vm0, %v480_v39, 0.0  ;;  %v3175_v39 = vld [vmem:[%s4548_s2 + $0x8] sm:$0xff] }
  0x49   : > { %351 = vadd.xlane.f32.xlu0 %v350_v56  ;;  %v382_v56 = vadd.f32 %v381_v50, %v272_v49  ;;  %v288_v49 = vld [vmem:[%s4546_s0 + $0x1e0] sm:$0xff]  ;;  %v413_v50 = vsel %vm292_vm0, %v289_v45, 0.0 }
  0x4b   : > { %355 = vadd.xlane.f32.xlu1 %v354_v59  ;;  %v386_v59 = vadd.f32 %v385_v54, %v274_v53  ;;  %v290_v53 = vld [vmem:[%s4546_s0 + $0x1f0] sm:$0xff]  ;;  %v417_v54 = vsel %vm292_vm0, %v291_v48, 0.0 }
  0x4d   : > { %543 = vadd.xlane.f32.xlu0 %v542_v63  ;;  %v574_v63 = vadd.f32 %v573_v58, %v465_v57  ;;  %v481_v57 = vmul.f32 %v288_v49, %v288_v49  ;;  %v605_v58 = vsel %vm292_vm0, %v482_v51, 0.0 }
  0x4f   : > { %547 = vadd.xlane.f32.xlu1 %v546_v4  ;;  %v578_v4 = vadd.f32 %v577_v62, %v467_v60  ;;  %v483_v60 = vmul.f32 %v290_v53, %v290_v53  ;;  %v606_v62 = vadd.f32 %v605_v58, %v481_v57 }
  0x51   : > { %359 = vadd.xlane.f32.xlu0 %v358_v8  ;;  %v390_v8 = vadd.f32 %v389_v2, %v276_v1 }
  0x53   : > { %363 = vadd.xlane.f32.xlu1 %v362_v11  ;;  %v394_v11 = vadd.f32 %v393_v6, %v278_v5 }
  0x55   : > { %551 = vadd.xlane.f32.xlu0 %v550_v15  ;;  %v582_v15 = vadd.f32 %v581_v10, %v469_v9 }
  0x57   : > { %555 = vadd.xlane.f32.xlu1 %v554_v20  ;;  %v586_v20 = vadd.f32 %v585_v14, %v471_v12 }
  0x59   : > { %367 = vadd.xlane.f32.xlu0 %v366_v24  ;;  %v398_v24 = vadd.f32 %v397_v18, %v280_v17 }
  0x5b   : > { %371 = vadd.xlane.f32.xlu1 %v370_v27  ;;  %v402_v27 = vadd.f32 %v401_v22, %v282_v21  ;;  %v4551_v21 = vmov 0  }
  0x5c   : > { %2664 = vset.pattern.permute.xlu0 %v4551_v21  ;;  %2665 = vset.pattern.permute.xlu1 %v4551_v21 }
  0x5d   : > { %559 = vadd.xlane.f32.xlu0 %v558_v31  ;;  %v590_v31 = vadd.f32 %v589_v26, %v473_v25 }
  0x5f   : > { %563 = vadd.xlane.f32.xlu1 %v562_v36  ;;  %v594_v36 = vadd.f32 %v593_v30, %v475_v28  ;;  %v3163_v30 = vld [vmem:[%s4548_s2] sm:$0xff] }
  0x61   : > { %375 = vadd.xlane.f32.xlu0 %v374_v40  ;;  %v406_v40 = vadd.f32 %v405_v34, %v284_v33 }
  0x63   : > { %379 = vadd.xlane.f32.xlu1 %v378_v43  ;;  %v410_v43 = vadd.f32 %v409_v38, %v286_v37 }
  0x65   : > { %567 = vadd.xlane.f32.xlu0 %v566_v47  ;;  %v598_v47 = vadd.f32 %v597_v42, %v477_v41 }
  0x67   : > { %571 = vadd.xlane.f32.xlu1 %v570_v52  ;;  %v602_v52 = vadd.f32 %v601_v46, %v479_v44 }
  0x69   : > { %383 = vadd.xlane.f32.xlu0 %v382_v56  ;;  %v414_v56 = vadd.f32 %v413_v50, %v288_v49 }
  0x6b   : > { %387 = vadd.xlane.f32.xlu1 %v386_v59  ;;  %v418_v59 = vadd.f32 %v417_v54, %v290_v53 }
  0x6d   : > { %575 = vadd.xlane.f32.xlu0 %v574_v63  ;;  %v610_v63 = vadd.f32 %v609_v61, %v483_v60  ;;  %v3200_v60 = vld [vmem:[%s4548_s2 + $0x18] sm:$0xff] }
  0x6f   : > { %579 = vadd.xlane.f32.xlu1 %v578_v4 }
  0x71   : > { %391 = vadd.xlane.f32.xlu0 %v390_v8 }
  0x73   : > { %395 = vadd.xlane.f32.xlu1 %v394_v11 }
  0x75   : > { %583 = vadd.xlane.f32.xlu0 %v582_v15 }
  0x77   : > { %587 = vadd.xlane.f32.xlu1 %v586_v20 }
  0x79   : > { %399 = vadd.xlane.f32.xlu0 %v398_v24 }
  0x7b   : > { %403 = vadd.xlane.f32.xlu1 %v402_v27 }
  0x7d   : > { %591 = vadd.xlane.f32.xlu0 %v590_v31 }
  0x7f   : > { %595 = vadd.xlane.f32.xlu1 %v594_v36 }
  0x81   : > { %407 = vadd.xlane.f32.xlu0 %v406_v40 }
  0x83   : > { %411 = vadd.xlane.f32.xlu1 %v410_v43 }
  0x85   : > { %599 = vadd.xlane.f32.xlu0 %v598_v47 }
  0x87   : > { %603 = vadd.xlane.f32.xlu1 %v602_v52 }
  0x89   : > { %415 = vadd.xlane.f32.xlu0 %v414_v56  ;;  %v3194_v56 = vld [vmem:[%s4548_s2 + $0x10] sm:$0xff] }
  0x8b   : > { %419 = vadd.xlane.f32.xlu1 %v418_v59 }
  0x8d   : > { %607 = vadd.xlane.f32.xlu0 %v606_v62 }
  0x8f   : > { %611 = vadd.xlane.f32.xlu1 %v610_v63 }
  0x9e   : > { %v296_v0 = vpop.xlane.xlu0 %295 }
  0x9f   : > { %v613_v1 = vmul.f32 0.0051020407, %v296_v0 }
  0xa0   : > { %v488_v2 = vpop.xlane.xlu1 %487 }
  0xa1   : > { %v677_v3 = vmul.f32 %v613_v1, %v613_v1  ;;  %v645_v4 = vmul.f32 0.0051020407, %v488_v2 }
  0xa2   : > { %v300_v5 = vpop.xlane.xlu0 %299 }
  0xa3   : > { %v709_v6 = vsub.f32 %v645_v4, %v677_v3  ;;  %v614_v7 = vmul.f32 0.0051020407, %v300_v5 }
  0xa4   : > { %v492_v8 = vpop.xlane.xlu1 %491 }
  0xa5   : > { %v773_v9 = vadd.f32 1e-05, %v709_v6  ;;  %v678_v10 = vmul.f32 %v614_v7, %v614_v7  ;;  %v646_v11 = vmul.f32 0.0051020407, %v492_v8 }
  0xa6   : > { %v304_v12 = vpop.xlane.xlu0 %303 }
  0xa7   : > { %2688 = vrsqrt.f32 %v773_v9  ;;  %v710_v13 = vsub.f32 %v646_v11, %v678_v10  ;;  %v3148_v14 = vmul.f32 0.0051020407, %v304_v12 }
  0xa8   : > { %v308_v15 = vpop.xlane.xlu1 %307 }
  0xa9   : > { %v774_v16 = vadd.f32 1e-05, %v710_v13  ;;  %v679_v17 = vmul.f32 %v3148_v14, %v3148_v14  ;;  %v3152_v18 = vmul.f32 0.0051020407, %v308_v15  ;;  %v3222_v13 = vld [vmem:[%s4548_s2 + $0x20] sm:$0xff] }
  0xaa   : > { %v496_v19 = vpop.xlane.xlu0 %495 }
  0xab   : > { %2690 = vrsqrt.f32 %v774_v16  ;;  %v647_v20 = vmul.f32 0.0051020407, %v496_v19  ;;  %v680_v23 = vmul.f32 %v3152_v18, %v3152_v18  ;;  %v3229_v19 = vld [vmem:[%s4548_s2 + $0x28] sm:$0xff] }
  0xac   : > { %v500_v22 = vpop.xlane.xlu1 %499 }
  0xad   : > { %v711_v24 = vsub.f32 %v647_v20, %v679_v17  ;;  %v648_v25 = vmul.f32 0.0051020407, %v500_v22 }
  0xae   : > { %v312_v26 = vpop.xlane.xlu0 %311 }
  0xaf   : > { %v775_v27 = vadd.f32 1e-05, %v711_v24  ;;  %v712_v28 = vsub.f32 %v648_v25, %v680_v23  ;;  %v3158_v29 = vmul.f32 0.0051020407, %v312_v26 }
  0xb0   : > { %v316_v31 = vpop.xlane.xlu1 %315 }
  0xb1   : > { %v2689_v32 = vpop.eup %2688  ;;  %2692 = vrsqrt.f32 %v775_v27  ;;  %v776_v33 = vadd.f32 1e-05, %v712_v28  ;;  %v681_v34 = vmul.f32 %v3158_v29, %v3158_v29  ;;  %v3167_v35 = vmul.f32 0.0051020407, %v316_v31 }
  0xb2   : > { %v504_v36 = vpop.xlane.xlu0 %503  ;;  %v3170_v37 = vmul.f32 %v2689_v32, %v3163_v30 }
  0xb3   : > { %2694 = vrsqrt.f32 %v776_v33  ;;  %v649_v38 = vmul.f32 0.0051020407, %v504_v36  ;;  %v682_v43 = vmul.f32 %v3167_v35, %v3167_v35 }
  0xb4   : > { %v508_v40 = vpop.xlane.xlu1 %507  ;;  %v869_v41 = vmul.f32 %v3170_v37, %v613_v1 }
  0xb5   : > { %v2691_v42 = vpop.eup %2690  ;;  %v713_v44 = vsub.f32 %v649_v38, %v681_v34  ;;  %v650_v45 = vmul.f32 0.0051020407, %v508_v40 }
  0xb6   : > { %933 = vrot.lane.b32.xlu0 %v869_v41, %s2857_s29  ;;  %v320_v46 = vpop.xlane.xlu0 %319  ;;  %v3182_v47 = vmul.f32 %v2691_v42, %v3175_v39 }
  0xb7   : > { %v777_v48 = vadd.f32 1e-05, %v713_v44  ;;  %v714_v49 = vsub.f32 %v650_v45, %v682_v43  ;;  %v3184_v50 = vmul.f32 0.0051020407, %v320_v46 }
  0xb8   : > { %v324_v51 = vpop.xlane.xlu1 %323  ;;  %v870_v52 = vmul.f32 %v3182_v47, %v614_v7 }
  0xb9   : > { %2696 = vrsqrt.f32 %v777_v48  ;;  %v778_v53 = vadd.f32 1e-05, %v714_v49  ;;  %v683_v54 = vmul.f32 %v3184_v50, %v3184_v50  ;;  %v3189_v55 = vmul.f32 0.0051020407, %v324_v51 }
  0xba   : > { %935 = vrot.lane.b32.xlu1 %v870_v52, %s2857_s29  ;;  %v512_v57 = vpop.xlane.xlu0 %511 }
  0xbb   : > { %v2693_v58 = vpop.eup %2692  ;;  %2698 = vrsqrt.f32 %v778_v53  ;;  %v651_v59 = vmul.f32 0.0051020407, %v512_v57  ;;  %v684_v0 = vmul.f32 %v3189_v55, %v3189_v55 }
  0xbc   : > { %v516_v61 = vpop.xlane.xlu1 %515  ;;  %v3203_v62 = vmul.f32 %v2693_v58, %v3194_v56 }
  0xbd   : > { %v2695_v63 = vpop.eup %2694  ;;  %v715_v1 = vsub.f32 %v651_v59, %v683_v54  ;;  %v652_v2 = vmul.f32 0.0051020407, %v516_v61 }
  0xbe   : > { %v328_v3 = vpop.xlane.xlu0 %327  ;;  %v871_v4 = vmul.f32 %v3203_v62, %v3148_v14  ;;  %v3210_v5 = vmul.f32 %v2695_v63, %v3200_v60 }
  0xbf   : > { %v779_v6 = vadd.f32 1e-05, %v715_v1  ;;  %v716_v7 = vsub.f32 %v652_v2, %v684_v0  ;;  %v3212_v8 = vmul.f32 0.0051020407, %v328_v3 }
  0xc0   : > { %v332_v9 = vpop.xlane.xlu1 %331  ;;  %937 = vrot.lane.b32.xlu1 %v871_v4, %s2857_s29  ;;  %v872_v15 = vmul.f32 %v3210_v5, %v3152_v18 }
  0xc1   : > { %2700 = vrsqrt.f32 %v779_v6  ;;  %v780_v10 = vadd.f32 1e-05, %v716_v7  ;;  %v685_v11 = vmul.f32 %v3212_v8, %v3212_v8  ;;  %v3217_v12 = vmul.f32 0.0051020407, %v332_v9 }
  0xc2   : > { %v520_v14 = vpop.xlane.xlu0 %519 }
  0xc3   : > { %v2697_v16 = vpop.eup %2696  ;;  %2702 = vrsqrt.f32 %v780_v10  ;;  %v653_v17 = vmul.f32 0.0051020407, %v520_v14  ;;  %v686_v24 = vmul.f32 %v3217_v12, %v3217_v12 }
  0xc4   : > { %v524_v20 = vpop.xlane.xlu1 %523  ;;  %939 = vrot.lane.b32.xlu1 %v872_v15, %s2857_s29  ;;  %v3233_v22 = vmul.f32 %v2697_v16, %v3222_v13 }
  0xc5   : > { %v2699_v23 = vpop.eup %2698  ;;  %v717_v25 = vsub.f32 %v653_v17, %v685_v11  ;;  %v654_v18 = vmul.f32 0.0051020407, %v524_v20 }
  0xc6   : > { %v336_v26 = vpop.xlane.xlu0 %335  ;;  %v873_v27 = vmul.f32 %v3233_v22, %v3158_v29  ;;  %v3240_v28 = vmul.f32 %v2699_v23, %v3229_v19  ;;  %v3254_v29 = vld [vmem:[%s4548_s2 + $0x30] sm:$0xff] }
  0xc7   : > { %v781_v31 = vadd.f32 1e-05, %v717_v25  ;;  %v718_v32 = vsub.f32 %v654_v18, %v686_v24  ;;  %v3242_v33 = vmul.f32 0.0051020407, %v336_v26 }
  0xc8   : > { %v340_v34 = vpop.xlane.xlu1 %339  ;;  %941 = vrot.lane.b32.xlu0 %v873_v27, %s2857_s29  ;;  %v874_v36 = vmul.f32 %v3240_v28, %v3167_v35  ;;  %v3260_v35 = vld [vmem:[%s4548_s2 + $0x38] sm:$0xff] }
  0xc9   : > { %2704 = vrsqrt.f32 %v781_v31  ;;  %v782_v38 = vadd.f32 1e-05, %v718_v32  ;;  %v687_v40 = vmul.f32 %v3242_v33, %v3242_v33  ;;  %v3249_v41 = vmul.f32 0.0051020407, %v340_v34 }
  0xca   : > { %943 = vrot.lane.b32.xlu1 %v874_v36, %s2857_s29  ;;  %v528_v42 = vpop.xlane.xlu0 %527 }
  0xcb   : > { %v2701_v43 = vpop.eup %2700  ;;  %2706 = vrsqrt.f32 %v782_v38  ;;  %v655_v44 = vmul.f32 0.0051020407, %v528_v42  ;;  %v688_v49 = vmul.f32 %v3249_v41, %v3249_v41 }
  0xcc   : > { %v532_v45 = vpop.xlane.xlu1 %531  ;;  %v3263_v46 = vmul.f32 %v2701_v43, %v3254_v29 }
  0xcd   : > { %v2703_v48 = vpop.eup %2702  ;;  %v719_v51 = vsub.f32 %v655_v44, %v687_v40  ;;  %v656_v52 = vmul.f32 0.0051020407, %v532_v45 }
  0xce   : > { %v344_v53 = vpop.xlane.xlu0 %343  ;;  %v875_v54 = vmul.f32 %v3263_v46, %v3184_v50  ;;  %v3270_v57 = vmul.f32 %v2703_v48, %v3260_v35  ;;  %v3284_v50 = vld [vmem:[%s4548_s2 + $0x40] sm:$0xff] }
  0xcf   : > { %v783_v58 = vadd.f32 1e-05, %v719_v51  ;;  %v720_v59 = vsub.f32 %v656_v52, %v688_v49  ;;  %v3272_v61 = vmul.f32 0.0051020407, %v344_v53 }
  0xd0   : > { %v348_v63 = vpop.xlane.xlu1 %347  ;;  %945 = vrot.lane.b32.xlu0 %v875_v54, %s2857_s29  ;;  %v876_v0 = vmul.f32 %v3270_v57, %v3189_v55  ;;  %v3290_v55 = vld [vmem:[%s4548_s2 + $0x48] sm:$0xff] }
  0xd1   : > { %2708 = vrsqrt.f32 %v783_v58  ;;  %v784_v1 = vadd.f32 1e-05, %v720_v59  ;;  %v689_v2 = vmul.f32 %v3272_v61, %v3272_v61  ;;  %v3279_v3 = vmul.f32 0.0051020407, %v348_v63 }
  0xd2   : > { %947 = vrot.lane.b32.xlu1 %v876_v0, %s2857_s29  ;;  %v536_v4 = vpop.xlane.xlu0 %535 }
  0xd3   : > { %v2705_v6 = vpop.eup %2704  ;;  %2710 = vrsqrt.f32 %v784_v1  ;;  %v657_v7 = vmul.f32 0.0051020407, %v536_v4  ;;  %v690_v14 = vmul.f32 %v3279_v3, %v3279_v3 }
  0xd4   : > { %v540_v9 = vpop.xlane.xlu1 %539  ;;  %v3293_v10 = vmul.f32 %v2705_v6, %v3284_v50 }
  0xd5   : > { %v2707_v11 = vpop.eup %2706  ;;  %v721_v15 = vsub.f32 %v657_v7, %v689_v2  ;;  %v658_v16 = vmul.f32 0.0051020407, %v540_v9 }
  0xd6   : > { %v352_v17 = vpop.xlane.xlu0 %351  ;;  %v877_v20 = vmul.f32 %v3293_v10, %v3212_v8  ;;  %v3300_v23 = vmul.f32 %v2707_v11, %v3290_v55  ;;  %v3314_v8 = vld [vmem:[%s4548_s2 + $0x50] sm:$0xff] }
  0xd7   : > { %v785_v24 = vadd.f32 1e-05, %v721_v15  ;;  %v722_v25 = vsub.f32 %v658_v16, %v690_v14  ;;  %v3302_v18 = vmul.f32 0.0051020407, %v352_v17 }
  0xd8   : > { %v356_v26 = vpop.xlane.xlu1 %355  ;;  %949 = vrot.lane.b32.xlu0 %v877_v20, %s2857_s29  ;;  %v878_v27 = vmul.f32 %v3300_v23, %v3217_v12  ;;  %v3320_v12 = vld [vmem:[%s4548_s2 + $0x58] sm:$0xff] }
  0xd9   : > { %2712 = vrsqrt.f32 %v785_v24  ;;  %v786_v31 = vadd.f32 1e-05, %v722_v25  ;;  %v691_v32 = vmul.f32 %v3302_v18, %v3302_v18  ;;  %v3309_v34 = vmul.f32 0.0051020407, %v356_v26 }
  0xda   : > { %951 = vrot.lane.b32.xlu1 %v878_v27, %s2857_s29  ;;  %v544_v36 = vpop.xlane.xlu0 %543 }
  0xdb   : > { %v2709_v38 = vpop.eup %2708  ;;  %2714 = vrsqrt.f32 %v786_v31  ;;  %v659_v40 = vmul.f32 0.0051020407, %v544_v36  ;;  %v692_v45 = vmul.f32 %v3309_v34, %v3309_v34 }
  0xdc   : > { %v548_v42 = vpop.xlane.xlu1 %547  ;;  %v3323_v43 = vmul.f32 %v2709_v38, %v3314_v8 }
  0xdd   : > { %v2711_v44 = vpop.eup %2710  ;;  %v723_v48 = vsub.f32 %v659_v40, %v691_v32  ;;  %v660_v49 = vmul.f32 0.0051020407, %v548_v42 }
  0xde   : > { %v360_v51 = vpop.xlane.xlu0 %359  ;;  %v879_v52 = vmul.f32 %v3323_v43, %v3242_v33  ;;  %v3330_v53 = vmul.f32 %v2711_v44, %v3320_v12  ;;  %v3344_v33 = vld [vmem:[%s4548_s2 + $0x60] sm:$0xff] }
  0xdf   : > { %v787_v54 = vadd.f32 1e-05, %v723_v48  ;;  %v724_v58 = vsub.f32 %v660_v49, %v692_v45  ;;  %v3332_v59 = vmul.f32 0.0051020407, %v360_v51 }
  0xe0   : > { %v364_v63 = vpop.xlane.xlu1 %363  ;;  %953 = vrot.lane.b32.xlu0 %v879_v52, %s2857_s29  ;;  %v880_v0 = vmul.f32 %v3330_v53, %v3249_v41  ;;  %v3350_v41 = vld [vmem:[%s4548_s2 + $0x68] sm:$0xff] }
  0xe1   : > { %2716 = vrsqrt.f32 %v787_v54  ;;  %v788_v1 = vadd.f32 1e-05, %v724_v58  ;;  %v693_v2 = vmul.f32 %v3332_v59, %v3332_v59  ;;  %v3339_v4 = vmul.f32 0.0051020407, %v364_v63 }
  0xe2   : > { %955 = vrot.lane.b32.xlu1 %v880_v0, %s2857_s29  ;;  %v552_v6 = vpop.xlane.xlu0 %551 }
  0xe3   : > { %v2713_v7 = vpop.eup %2712  ;;  %2718 = vrsqrt.f32 %v788_v1  ;;  %v661_v9 = vmul.f32 0.0051020407, %v552_v6  ;;  %v694_v16 = vmul.f32 %v3339_v4, %v3339_v4 }
  0xe4   : > { %v556_v11 = vpop.xlane.xlu1 %555  ;;  %v3353_v14 = vmul.f32 %v2713_v7, %v3344_v33 }
  0xe5   : > { %v2715_v15 = vpop.eup %2714  ;;  %v725_v17 = vsub.f32 %v661_v9, %v693_v2  ;;  %v662_v20 = vmul.f32 0.0051020407, %v556_v11 }
  0xe6   : > { %v368_v24 = vpop.xlane.xlu0 %367  ;;  %v881_v25 = vmul.f32 %v3353_v14, %v3272_v61  ;;  %v3360_v26 = vmul.f32 %v2715_v15, %v3350_v41  ;;  %v3374_v61 = vld [vmem:[%s4548_s2 + $0x70] sm:$0xff] }
  0xe7   : > { %v789_v27 = vadd.f32 1e-05, %v725_v17  ;;  %v726_v31 = vsub.f32 %v662_v20, %v694_v16  ;;  %v3362_v32 = vmul.f32 0.0051020407, %v368_v24 }
  0xe8   : > { %v372_v36 = vpop.xlane.xlu1 %371  ;;  %957 = vrot.lane.b32.xlu0 %v881_v25, %s2857_s29  ;;  %v882_v38 = vmul.f32 %v3360_v26, %v3279_v3  ;;  %v3380_v3 = vld [vmem:[%s4548_s2 + $0x78] sm:$0xff] }
  0xe9   : > { %2720 = vrsqrt.f32 %v789_v27  ;;  %v790_v40 = vadd.f32 1e-05, %v726_v31  ;;  %v695_v42 = vmul.f32 %v3362_v32, %v3362_v32  ;;  %v3369_v44 = vmul.f32 0.0051020407, %v372_v36 }
  0xea   : > { %959 = vrot.lane.b32.xlu1 %v882_v38, %s2857_s29  ;;  %v560_v45 = vpop.xlane.xlu0 %559 }
  0xeb   : > { %v2717_v48 = vpop.eup %2716  ;;  %2722 = vrsqrt.f32 %v790_v40  ;;  %v663_v49 = vmul.f32 0.0051020407, %v560_v45  ;;  %v696_v58 = vmul.f32 %v3369_v44, %v3369_v44 }
  0xec   : > { %v564_v51 = vpop.xlane.xlu1 %563  ;;  %v3383_v52 = vmul.f32 %v2717_v48, %v3374_v61 }
  0xed   : > { %v2719_v54 = vpop.eup %2718  ;;  %v727_v63 = vsub.f32 %v663_v49, %v695_v42  ;;  %v664_v0 = vmul.f32 0.0051020407, %v564_v51 }
  0xee   : > { %v376_v1 = vpop.xlane.xlu0 %375  ;;  %v883_v2 = vmul.f32 %v3383_v52, %v3302_v18  ;;  %v3390_v6 = vmul.f32 %v2719_v54, %v3380_v3  ;;  %v3404_v18 = vld [vmem:[%s4548_s2 + $0x80] sm:$0xff] }
  0xef   : > { %v791_v7 = vadd.f32 1e-05, %v727_v63  ;;  %v728_v9 = vsub.f32 %v664_v0, %v696_v58  ;;  %v3392_v11 = vmul.f32 0.0051020407, %v376_v1 }
  0xf0   : > { %v380_v15 = vpop.xlane.xlu1 %379  ;;  %961 = vrot.lane.b32.xlu0 %v883_v2, %s2857_s29  ;;  %v884_v16 = vmul.f32 %v3390_v6, %v3309_v34  ;;  %v3410_v34 = vld [vmem:[%s4548_s2 + $0x88] sm:$0xff] }
  0xf1   : > { %2724 = vrsqrt.f32 %v791_v7  ;;  %v792_v17 = vadd.f32 1e-05, %v728_v9  ;;  %v697_v20 = vmul.f32 %v3392_v11, %v3392_v11  ;;  %v3399_v24 = vmul.f32 0.0051020407, %v380_v15 }
  0xf2   : > { %963 = vrot.lane.b32.xlu1 %v884_v16, %s2857_s29  ;;  %v568_v25 = vpop.xlane.xlu0 %567 }
  0xf3   : > { %v2721_v27 = vpop.eup %2720  ;;  %2726 = vrsqrt.f32 %v792_v17  ;;  %v665_v31 = vmul.f32 0.0051020407, %v568_v25  ;;  %v698_v42 = vmul.f32 %v3399_v24, %v3399_v24 }
  0xf4   : > { %v572_v36 = vpop.xlane.xlu1 %571  ;;  %v3413_v38 = vmul.f32 %v2721_v27, %v3404_v18 }
  0xf5   : > { %v2723_v40 = vpop.eup %2722  ;;  %v729_v45 = vsub.f32 %v665_v31, %v697_v20  ;;  %v666_v48 = vmul.f32 0.0051020407, %v572_v36 }
  0xf6   : > { %v384_v49 = vpop.xlane.xlu0 %383  ;;  %v885_v51 = vmul.f32 %v3413_v38, %v3332_v59  ;;  %v3420_v54 = vmul.f32 %v2723_v40, %v3410_v34  ;;  %v3434_v59 = vld [vmem:[%s4548_s2 + $0x90] sm:$0xff] }
  0xf7   : > { %v793_v58 = vadd.f32 1e-05, %v729_v45  ;;  %v730_v63 = vsub.f32 %v666_v48, %v698_v42  ;;  %v3422_v0 = vmul.f32 0.0051020407, %v384_v49 }
  0xf8   : > { %v388_v1 = vpop.xlane.xlu1 %387  ;;  %965 = vrot.lane.b32.xlu0 %v885_v51, %s2857_s29  ;;  %v886_v2 = vmul.f32 %v3420_v54, %v3339_v4  ;;  %v3440_v4 = vld [vmem:[%s4548_s2 + $0x98] sm:$0xff] }
  0xf9   : > { %2728 = vrsqrt.f32 %v793_v58  ;;  %v794_v7 = vadd.f32 1e-05, %v730_v63  ;;  %v699_v9 = vmul.f32 %v3422_v0, %v3422_v0  ;;  %v3429_v15 = vmul.f32 0.0051020407, %v388_v1  ;;  %4578 = vst [vmem:[#allocation2_spill] sm:$0xff] %v3440_v4 }
  0xfa   : > { %967 = vrot.lane.b32.xlu1 %v886_v2, %s2857_s29  ;;  %v576_v16 = vpop.xlane.xlu0 %575 }
  0xfb   : > { %v2725_v17 = vpop.eup %2724  ;;  %2730 = vrsqrt.f32 %v794_v7  ;;  %v667_v20 = vmul.f32 0.0051020407, %v576_v16  ;;  %v700_v36 = vmul.f32 %v3429_v15, %v3429_v15 }
  0xfc   : > { %v580_v25 = vpop.xlane.xlu1 %579  ;;  %v3443_v27 = vmul.f32 %v2725_v17, %v3434_v59 }
  0xfd   : > { %v2727_v31 = vpop.eup %2726  ;;  %v731_v40 = vsub.f32 %v667_v20, %v699_v9  ;;  %v668_v42 = vmul.f32 0.0051020407, %v580_v25 }
  0xfe   : > { %4579 = vst [vmem:[#allocation3_spill] sm:$0xff] %v3443_v27  ;;  %v392_v45 = vpop.xlane.xlu0 %391  ;;  %v887_v48 = vmul.f32 %v3443_v27, %v3362_v32  ;;  %v3450_v49 = vmul.f32 %v2727_v31, %v3440_v4  ;;  %v3464_v32 = vld [vmem:[%s4548_s2 + $0xa0] sm:$0xff] }
  0xff   : > { %v795_v51 = vadd.f32 1e-05, %v731_v40  ;;  %v732_v58 = vsub.f32 %v668_v42, %v700_v36  ;;  %v3452_v63 = vmul.f32 0.0051020407, %v392_v45  ;;  %4581 = vst [vmem:[#allocation5_spill] sm:$0xff] %v3464_v32 }
 0x100   : > { %4580 = vst [vmem:[#allocation4_spill] sm:$0xff] %v3450_v49  ;;  %v396_v1 = vpop.xlane.xlu1 %395  ;;  %969 = vrot.lane.b32.xlu0 %v887_v48, %s2857_s29  ;;  %v888_v2 = vmul.f32 %v3450_v49, %v3369_v44  ;;  %v3470_v44 = vld [vmem:[%s4548_s2 + $0xa8] sm:$0xff] }
 0x101   : > { %2732 = vrsqrt.f32 %v795_v51  ;;  %v796_v7 = vadd.f32 1e-05, %v732_v58  ;;  %v701_v9 = vmul.f32 %v3452_v63, %v3452_v63  ;;  %v3459_v16 = vmul.f32 0.0051020407, %v396_v1 }
 0x102   : > { %971 = vrot.lane.b32.xlu1 %v888_v2, %s2857_s29  ;;  %v584_v17 = vpop.xlane.xlu0 %583 }
 0x103   : > { %v2729_v20 = vpop.eup %2728  ;;  %2734 = vrsqrt.f32 %v796_v7  ;;  %v669_v25 = vmul.f32 0.0051020407, %v584_v17  ;;  %v702_v42 = vmul.f32 %v3459_v16, %v3459_v16 }
 0x104   : > { %v588_v31 = vpop.xlane.xlu1 %587  ;;  %v3473_v36 = vmul.f32 %v2729_v20, %v3464_v32 }
 0x105   : > { %v2731_v40 = vpop.eup %2730  ;;  %v733_v45 = vsub.f32 %v669_v25, %v701_v9  ;;  %v670_v48 = vmul.f32 0.0051020407, %v588_v31 }
 0x106   : > { %v400_v51 = vpop.xlane.xlu0 %399  ;;  %v889_v58 = vmul.f32 %v3473_v36, %v3392_v11  ;;  %v3480_v1 = vmul.f32 %v2731_v40, %v3470_v44  ;;  %v3494_v11 = vld [vmem:[%s4548_s2 + $0xb0] sm:$0xff] }
 0x107   : > { %v797_v2 = vadd.f32 1e-05, %v733_v45  ;;  %v734_v7 = vsub.f32 %v670_v48, %v702_v42  ;;  %v3482_v17 = vmul.f32 0.0051020407, %v400_v51 }
 0x108   : > { %4582 = vst [vmem:[#allocation6_spill] sm:$0xff] %v3480_v1  ;;  %v404_v21 = vpop.xlane.xlu1 %403  ;;  %973 = vrot.lane.b32.xlu0 %v889_v58, %s2857_s29  ;;  %v890_v20 = vmul.f32 %v3480_v1, %v3399_v24  ;;  %v3500_v24 = vld [vmem:[%s4548_s2 + $0xb8] sm:$0xff] }
 0x109   : > { %2736 = vrsqrt.f32 %v797_v2  ;;  %v798_v9 = vadd.f32 1e-05, %v734_v7  ;;  %v703_v25 = vmul.f32 %v3482_v17, %v3482_v17  ;;  %v3489_v31 = vmul.f32 0.0051020407, %v404_v21  ;;  %4583 = vst [vmem:[#allocation7_spill] sm:$0xff] %v3500_v24 }
 0x10a   : > { %975 = vrot.lane.b32.xlu1 %v890_v20, %s2857_s29  ;;  %v592_v40 = vpop.xlane.xlu0 %591 }
 0x10b   : > { %v2733_v42 = vpop.eup %2732  ;;  %2738 = vrsqrt.f32 %v798_v9  ;;  %v671_v45 = vmul.f32 0.0051020407, %v592_v40  ;;  %v704_v58 = vmul.f32 %v3489_v31, %v3489_v31 }
 0x10c   : > { %v596_v48 = vpop.xlane.xlu1 %595  ;;  %v3503_v21 = vmul.f32 %v2733_v42, %v3494_v11 }
 0x10d   : > { %v2735_v51 = vpop.eup %2734  ;;  %v735_v2 = vsub.f32 %v671_v45, %v703_v25  ;;  %v672_v7 = vmul.f32 0.0051020407, %v596_v48 }
 0x10e   : > { %4584 = vst [vmem:[#allocation8_spill] sm:$0xff] %v3503_v21  ;;  %v408_v20 = vpop.xlane.xlu0 %407  ;;  %v891_v9 = vmul.f32 %v3503_v21, %v3422_v0  ;;  %v3510_v40 = vmul.f32 %v2735_v51, %v3500_v24  ;;  %v3518_v0 = vld [vmem:[%s4548_s2 + $0xc0] sm:$0xff] }
 0x10f   : > { %v799_v32 = vadd.f32 1e-05, %v735_v2  ;;  %v736_v1 = vsub.f32 %v672_v7, %v704_v58  ;;  %v641_v4 = vmul.f32 0.0051020407, %v408_v20  ;;  %4586 = vst [vmem:[#allocation10_spill] sm:$0xff] %v3518_v0  ;;  %v3524_v2 = vld [vmem:[%s4548_s2 + $0xc8] sm:$0xff] }
 0x110   : > { %4585 = vst [vmem:[#allocation9_spill] sm:$0xff] %v3510_v40  ;;  %v412_v49 = vpop.xlane.xlu1 %411  ;;  %977 = vrot.lane.b32.xlu0 %v891_v9, %s2857_s29  ;;  %v892_v42 = vmul.f32 %v3510_v40, %v3429_v15  ;;  %4587 = vst [vmem:[#allocation11_spill] sm:$0xff] %v3524_v2 }
 0x111   : > { %2740 = vrsqrt.f32 %v799_v32  ;;  %v800_v27 = vadd.f32 1e-05, %v736_v1  ;;  %v705_v25 = vmul.f32 %v641_v4, %v641_v4  ;;  %v642_v45 = vmul.f32 0.0051020407, %v412_v49 }
 0x112   : > { %979 = vrot.lane.b32.xlu1 %v892_v42, %s2857_s29  ;;  %v600_v48 = vpop.xlane.xlu0 %599 }
 0x113   : > { %v2737_v51 = vpop.eup %2736  ;;  %2742 = vrsqrt.f32 %v800_v27  ;;  %v673_v58 = vmul.f32 0.0051020407, %v600_v48  ;;  %v706_v1 = vmul.f32 %v642_v45, %v642_v45 }
 0x114   : > { %v604_v15 = vpop.xlane.xlu1 %603  ;;  %v3527_v32 = vmul.f32 %v2737_v51, %v3518_v0 }
 0x115   : > { %v2739_v49 = vpop.eup %2738  ;;  %v737_v7 = vsub.f32 %v673_v58, %v705_v25  ;;  %v674_v20 = vmul.f32 0.0051020407, %v604_v15 }
 0x116   : > { %v416_v9 = vpop.xlane.xlu0 %415  ;;  %v893_v42 = vmul.f32 %v3527_v32, %v3452_v63  ;;  %v3532_v27 = vmul.f32 %v2739_v49, %v3524_v2  ;;  %v3540_v63 = vld [vmem:[%s4548_s2 + $0xd0] sm:$0xff] }
 0x117   : > { %v801_v48 = vadd.f32 1e-05, %v737_v7  ;;  %v738_v24 = vsub.f32 %v674_v20, %v706_v1  ;;  %v643_v40 = vmul.f32 0.0051020407, %v416_v9 }
 0x118   : > { %4588 = vst [vmem:[#allocation12_spill] sm:$0xff] %v3532_v27  ;;  %v420_v21 = vpop.xlane.xlu1 %419  ;;  %981 = vrot.lane.b32.xlu0 %v893_v42, %s2857_s29  ;;  %v894_v51 = vmul.f32 %v3532_v27, %v3459_v16  ;;  %v3546_v16 = vld [vmem:[%s4548_s2 + $0xd8] sm:$0xff] }
 0x119   : > { %2744 = vrsqrt.f32 %v801_v48  ;;  %v802_v0 = vadd.f32 1e-05, %v738_v24  ;;  %v707_v25 = vmul.f32 %v643_v40, %v643_v40  ;;  %v644_v58 = vmul.f32 0.0051020407, %v420_v21 }
 0x11a   : > { %983 = vrot.lane.b32.xlu1 %v894_v51, %s2857_s29  ;;  %v608_v15 = vpop.xlane.xlu0 %607 }
 0x11b   : > { %v2741_v49 = vpop.eup %2740  ;;  %2746 = vrsqrt.f32 %v802_v0  ;;  %v708_v1 = vmul.f32 %v644_v58, %v644_v58  ;;  %v675_v7 = vmul.f32 0.0051020407, %v608_v15 }
 0x11c   : > { %v612_v24 = vpop.xlane.xlu1 %611  ;;  %v3549_v21 = vmul.f32 %v2741_v49, %v3540_v63  ;;  %v3568_v49 = vld [vmem:[%s4548_s2 + $0xe8] sm:$0xff] }
 0x11d   : > { %v2743_v20 = vpop.eup %2742  ;;  %v739_v9 = vsub.f32 %v675_v7, %v707_v25  ;;  %v676_v42 = vmul.f32 0.0051020407, %v612_v24  ;;  %v3562_v25 = vld [vmem:[%s4548_s2 + $0xe0] sm:$0xff] }
 0x11e   : > { %v895_v48 = vmul.f32 %v3549_v21, %v3482_v17  ;;  %v3554_v51 = vmul.f32 %v2743_v20, %v3546_v16 }
 0x11f   : > { %v803_v0 = vadd.f32 1e-05, %v739_v9  ;;  %v740_v15 = vsub.f32 %v676_v42, %v708_v1  ;;  %v3585_v9 = vld [vmem:[%s4548_s2 + $0xf8] sm:$0xff] }
 0x120   : > { %985 = vrot.lane.b32.xlu0 %v895_v48, %s2857_s29  ;;  %v896_v27 = vmul.f32 %v3554_v51, %v3489_v31 }
 0x121   : > { %2748 = vrsqrt.f32 %v803_v0  ;;  %v804_v2 = vadd.f32 1e-05, %v740_v15 }
 0x122   : > { %987 = vrot.lane.b32.xlu1 %v896_v27, %s2857_s29 }
 0x123   : > { %v2745_v17 = vpop.eup %2744  ;;  %2750 = vrsqrt.f32 %v804_v2  ;;  %v3579_v2 = vld [vmem:[%s4548_s2 + $0xf0] sm:$0xff] }
 0x124   : > { %v865_v1 = vmul.f32 %v2745_v17, %v3562_v25 }
 0x125   : > { %v2747_v7 = vpop.eup %2746 }
 0x126   : > { %v897_v31 = vmul.f32 %v865_v1, %v641_v4  ;;  %v3572_v24 = vmul.f32 %v2747_v7, %v3568_v49 }
 0x128   : > { %989 = vrot.lane.b32.xlu0 %v897_v31, %s2857_s29  ;;  %v898_v20 = vmul.f32 %v3572_v24, %v642_v45 }
 0x12a   : > { %991 = vrot.lane.b32.xlu1 %v898_v20, %s2857_s29 }
 0x12b   : > { %v2749_v27 = vpop.eup %2748 }
 0x12c   : > { %1063 = vperm.xlu0 %2664, %v3170_v37   ;;  %v3589_v4 = vmul.f32 %v2749_v27, %v3579_v2  ;;  %v936_v37 = vpop.permute.xlu1 %935 }
 0x12d   : > { %v2751_v42 = vpop.eup %2750 }
 0x12e   : > { %1068 = vperm.xlu1 %2665, %v3182_v47   ;;  %v3593_v45 = vmul.f32 %v2751_v42, %v3585_v9  ;;  %v899_v0 = vmul.f32 %v3589_v4, %v643_v40 }
 0x130   : > { %v900_v48 = vmul.f32 %v3593_v45, %v644_v58 }
 0x132   : > { %995 = vrot.lane.b32.xlu0 %v900_v48, %s2857_s29  ;;  %993 = vrot.lane.b32.xlu1 %v899_v0, %s2857_s29  ;;  %v938_v47 = vpop.permute.xlu1 %937  ;;  %v4590_v0 = vld [vmem:[#allocation11_spill] sm:$0xff] }
 0x136   : > { %1083 = vperm.xlu0 %2664, %v3233_v22   ;;  %1073 = vperm.xlu1 %2665, %v3203_v62   ;;  %v1030_v62 = vsub.f32 %v3175_v39, %v936_v37  ;;  %v940_v22 = vpop.permute.xlu1 %939 }
 0x13a   : > { %1103 = vperm.xlu0 %2664, %v3293_v10   ;;  %1078 = vperm.xlu1 %2665, %v3210_v5   ;;  %v934_v5 = vpop.permute.xlu0 %933 }
 0x13c   : > { %v944_v10 = vpop.permute.xlu1 %943 }
 0x13e   : > { %1123 = vperm.xlu0 %2664, %v3353_v14   ;;  %1088 = vperm.xlu1 %2665, %v3240_v28   ;;  %v4564_v28 = vmov 1  }
 0x142   : > { %1143 = vperm.xlu0 %2664, %v3413_v38   ;;  %1093 = vperm.xlu1 %2665, %v3263_v46   ;;  %v1031_v46 = vsub.f32 %v3194_v56, %v938_v47  ;;  %v1029_v56 = vsub.f32 %v3163_v30, %v934_v5  ;;  %v4591_v47 = vld [vmem:[#allocation3_spill] sm:$0xff]  ;;  %v4593_v5 = vld [vmem:[#allocation2_spill] sm:$0xff] }
 0x144   : > { %v948_v14 = vpop.permute.xlu1 %947 }
 0x145   : > { %v1036_v15 = vsub.f32 %v3260_v35, %v948_v14 }
 0x146   : > { %1163 = vperm.xlu0 %2664, %v3473_v36   ;;  %1098 = vperm.xlu1 %2665, %v3270_v57   ;;  %v942_v57 = vpop.permute.xlu0 %941 }
 0x14a   : > { %1183 = vperm.xlu0 %2664, %v3527_v32   ;;  %1108 = vperm.xlu1 %2665, %v3300_v23   ;;  %v1034_v23 = vsub.f32 %v3229_v19, %v944_v10  ;;  %v1032_v19 = vsub.f32 %v3200_v60, %v940_v22 }
 0x14c   : > { %v952_v36 = vpop.permute.xlu1 %951 }
 0x14e   : > { %1203 = vperm.xlu0 %2664, %v865_v1   ;;  %1113 = vperm.xlu1 %2665, %v3323_v43   ;;  %v946_v43 = vpop.permute.xlu0 %945 }
 0x14f   : > { %v1035_v39 = vsub.f32 %v3254_v29, %v946_v43 }
 0x152   : > { %2679 = vset.pattern.permute.xlu0 %v4564_v28  ;;  %1118 = vperm.xlu1 %2665, %v3330_v53   ;;  %v950_v38 = vpop.permute.xlu0 %949  ;;  %v1038_v53 = vsub.f32 %v3290_v55, %v952_v36  ;;  %v4598_v36 = vld [vmem:[#allocation7_spill] sm:$0xff] }
 0x153   : > { %1292 = vperm.xlu0 %2679, %v1030_v62  }
 0x154   : > { %v956_v40 = vpop.permute.xlu1 %955 }
 0x156   : > { %1128 = vperm.xlu1 %2665, %v3360_v26   ;;  %v954_v26 = vpop.permute.xlu0 %953 }
 0x157   : > { %1297 = vperm.xlu0 %2679, %v1031_v46  }
 0x15a   : > { %1133 = vperm.xlu1 %2665, %v3383_v52   ;;  %v1039_v52 = vsub.f32 %v3314_v8, %v954_v26  ;;  %v958_v29 = vpop.permute.xlu0 %957  ;;  %v1037_v8 = vsub.f32 %v3284_v50, %v950_v38 }
 0x15b   : > { %1312 = vperm.xlu0 %2679, %v1034_v23   ;;  %v4595_v23 = vld [vmem:[#allocation5_spill] sm:$0xff] }
 0x15c   : > { %v960_v32 = vpop.permute.xlu1 %959 }
 0x15d   : > { %v1042_v30 = vsub.f32 %v3350_v41, %v960_v32  ;;  %v4600_v32 = vld [vmem:[#allocation10_spill] sm:$0xff] }
 0x15e   : > { %1138 = vperm.xlu1 %2665, %v3390_v6   ;;  %v1033_v6 = vsub.f32 %v3222_v13, %v942_v57  ;;  %v1040_v13 = vsub.f32 %v3320_v12, %v956_v40  ;;  %v4589_v12 = vmov 0   ;;  %v4594_v57 = vld [vmem:[#allocation6_spill] sm:$0xff] }
 0x15f   : > { %1317 = vperm.xlu0 %2679, %v1035_v39   ;;  %v4597_v39 = vld [vmem:[#allocation9_spill] sm:$0xff] }
 0x162   : > { %2666 = vset.pattern.permute.xlu1 %v4564_v28  ;;  %v962_v58 = vpop.permute.xlu0 %961 }
 0x163   : > { %1287 = vperm.xlu1 %2666, %v1029_v56   ;;  %1332 = vperm.xlu0 %2679, %v1038_v53   ;;  %v1043_v17 = vsub.f32 %v3374_v61, %v962_v58  ;;  %v1041_v61 = vsub.f32 %v3344_v33, %v958_v29 }
 0x164   : > { %v964_v55 = vpop.permute.xlu1 %963 }
 0x165   : > { %v1044_v27 = vsub.f32 %v3380_v3, %v964_v55 }
 0x167   : > { %1302 = vperm.xlu1 %2666, %v1032_v19   ;;  %1337 = vperm.xlu0 %2679, %v1039_v52   ;;  %v4599_v19 = vld [vmem:[#allocation12_spill] sm:$0xff] }
 0x16a   : > { %v966_v1 = vpop.permute.xlu0 %965 }
 0x16b   : > { %1307 = vperm.xlu1 %2666, %v1033_v6   ;;  %1352 = vperm.xlu0 %2679, %v1042_v30  }
 0x16c   : > { %v968_v60 = vpop.permute.xlu1 %967 }
 0x16d   : > { %v1046_v7 = vsub.f32 %v3410_v34, %v968_v60 }
 0x16f   : > { %1322 = vperm.xlu1 %2666, %v1036_v15   ;;  %1357 = vperm.xlu0 %2679, %v1043_v17  }
 0x172   : > { %v970_v31 = vpop.permute.xlu0 %969 }
 0x173   : > { %1327 = vperm.xlu1 %2666, %v1037_v8   ;;  %1372 = vperm.xlu0 %2679, %v1046_v7   ;;  %v1047_v41 = vsub.f32 %v3434_v59, %v970_v31  ;;  %v1045_v59 = vsub.f32 %v3404_v18, %v966_v1 }
 0x174   : > { %v972_v35 = vpop.permute.xlu1 %971 }
 0x175   : > { %v1048_v18 = vsub.f32 %v4593_v5, %v972_v35 }
 0x177   : > { %1342 = vperm.xlu1 %2666, %v1040_v13   ;;  %1377 = vperm.xlu0 %2679, %v1047_v41  }
 0x17a   : > { %v974_v42 = vpop.permute.xlu0 %973 }
 0x17b   : > { %1347 = vperm.xlu1 %2666, %v1041_v61   ;;  %v1049_v43 = vsub.f32 %v4595_v23, %v974_v42 }
 0x17c   : > { %v976_v20 = vpop.permute.xlu1 %975 }
 0x17d   : > { %v1050_v50 = vsub.f32 %v3470_v44, %v976_v20 }
 0x17f   : > { %1362 = vperm.xlu1 %2666, %v1044_v27   ;;  %1392 = vperm.xlu0 %2679, %v1050_v50   ;;  %v2784_v50 = vld [vmem:[%s4546_s0 + $0x10] sm:$0xff] }
 0x182   : > { %v978_v34 = vpop.permute.xlu0 %977 }
 0x183   : > { %v1051_v48 = vsub.f32 %v3494_v11, %v978_v34  ;;  %2667 = vset.pattern.permute.xlu1 %v4589_v12  ;;  %v4592_v11 = vld [vmem:[#allocation4_spill] sm:$0xff] }
 0x184   : > { %1148 = vperm.xlu1 %2667, %v3420_v54   ;;  %v980_v33 = vpop.permute.xlu1 %979 }
 0x185   : > { %1397 = vperm.xlu0 %2679, %v1051_v48   ;;  %v1052_v56 = vsub.f32 %v4598_v36, %v980_v33  ;;  %v2787_v48 = vld [vmem:[%s4546_s0 + $0x8] sm:$0xff] }
 0x188   : > { %2668 = vset.pattern.permute.xlu1 %v4564_v28 }
 0x189   : > { %1367 = vperm.xlu1 %2668, %v1045_v59  }
 0x18a   : > { %v982_v37 = vpop.permute.xlu0 %981 }
 0x18b   : > { %v1053_v6 = vsub.f32 %v4600_v32, %v982_v37  ;;  %v1574_v32 = vld [vmem:[%s3748_s14 + $0x8] sm:$0xff] }
 0x18c   : > { %v984_v3 = vpop.permute.xlu1 %983  ;;  %1669 = vmatprep.mubr.f32.mxu0 %v1574_v32 }
 0x18d   : > { %v1054_v44 = vsub.f32 %v4590_v0, %v984_v3  ;;  %2669 = vset.pattern.permute.xlu1 %v4589_v12 }
 0x18e   : > { %1153 = vperm.xlu1 %2669, %v4591_v47  }
 0x18f   : > { %1412 = vperm.xlu0 %2679, %v1054_v44  }
 0x192   : > { %1158 = vperm.xlu1 %2669, %v4592_v11   ;;  %v986_v62 = vpop.permute.xlu0 %985  ;;  %v2788_v11 = vld [vmem:[%s4546_s0 + $0x20] sm:$0xff] }
 0x193   : > { %v1055_v54 = vsub.f32 %v3540_v63, %v986_v62  ;;  %v4596_v63 = vld [vmem:[#allocation8_spill] sm:$0xff] }
 0x194   : > { %v988_v22 = vpop.permute.xlu1 %987 }
 0x195   : > { %1417 = vperm.xlu0 %2679, %v1055_v54   ;;  %v1056_v1 = vsub.f32 %v3546_v16, %v988_v22  ;;  %v2789_v54 = vld [vmem:[%s4546_s0 + $0x28] sm:$0xff] }
 0x196   : > { %2670 = vset.pattern.permute.xlu1 %v4564_v28 }
 0x197   : > { %1382 = vperm.xlu1 %2670, %v1048_v18   ;;  %v2790_v18 = vld [vmem:[%s4546_s0 + $0x30] sm:$0xff] }
 0x19a   : > { %v990_v14 = vpop.permute.xlu0 %989 }
 0x19b   : > { %2671 = vset.pattern.permute.xlu1 %v4589_v12  ;;  %v1057_v16 = vsub.f32 %v3562_v25, %v990_v14 }
 0x19c   : > { %v992_v46 = vpop.permute.xlu1 %991  ;;  %1168 = vperm.xlu1 %2671, %v4594_v57  }
 0x19d   : > { %v1058_v10 = vsub.f32 %v3568_v49, %v992_v46 }
 0x19f   : > { %1432 = vperm.xlu0 %2679, %v1058_v10  }
 0x1a0   : > { %2672 = vset.pattern.permute.xlu1 %v4564_v28 }
 0x1a1   : > { %1387 = vperm.xlu1 %2672, %v1049_v43  }
 0x1a5   : > { %2673 = vset.pattern.permute.xlu1 %v4589_v12 }
 0x1a6   : > { %1173 = vperm.xlu1 %2673, %v4596_v63  }
 0x1aa   : > { %1178 = vperm.xlu1 %2673, %v4597_v39  }
 0x1ab   : > { %v1064_v38 = vpop.permute.xlu0 %1063 }
 0x1ac   : > { %v1222_v59 = vmul.f32 %v2787_v48, %v1064_v38 }
 0x1ad   : > { %v1069_v53 = vpop.permute.xlu1 %1068 }
 0x1ae   : > { %2674 = vset.pattern.permute.xlu1 %v4564_v28  ;;  %v1223_v42 = vmul.f32 %v2784_v50, %v1069_v53 }
 0x1af   : > { %1402 = vperm.xlu1 %2674, %v1052_v56   ;;  %v996_v49 = vpop.permute.xlu0 %995  ;;  %v2792_v56 = vld [vmem:[%s4546_s0 + $0x50] sm:$0xff] }
 0x1b0   : > { %v1060_v25 = vsub.f32 %v3585_v9, %v996_v49  ;;  %v2793_v49 = vld [vmem:[%s4546_s0 + $0x58] sm:$0xff] }
 0x1b1   : > { %v994_v26 = vpop.permute.xlu1 %993 }
 0x1b2   : > { %v1059_v40 = vsub.f32 %v3579_v2, %v994_v26 }
 0x1b3   : > { %2675 = vset.pattern.permute.xlu1 %v4589_v12 }
 0x1b4   : > { %1188 = vperm.xlu1 %2675, %v4599_v19   ;;  %1437 = vperm.xlu0 %2679, %v1059_v40  }
 0x1b5   : > { %v1074_v52 = vpop.permute.xlu1 %1073  ;;  %v3662_v29 = vpop.permute.xlu0 %1083 }
 0x1b6   : > { %v1225_v62 = vmul.f32 %v2788_v11, %v1074_v52  ;;  %v1226_v5 = vmul.f32 %v2789_v54, %v1074_v52 }
 0x1b8   : > { %2676 = vset.pattern.permute.xlu1 %v4564_v28  ;;  %2684 = vset.pattern.permute.xlu0 %v4589_v12 }
 0x1b9   : > { %v1079_v30 = vpop.permute.xlu1 %1078  ;;  %1407 = vperm.xlu1 %2676, %v1053_v6   ;;  %v3667_v58 = vpop.permute.xlu0 %1103  ;;  %v1590_v6 = vld [vmem:[%s3748_s14 + $0x88] sm:$0xff] }
 0x1ba   : > { %v1227_v22 = vmul.f32 %v2790_v18, %v1079_v30  ;;  %1717 = vmatprep.mubr.f32.mxu1 %v1590_v6 }
 0x1bd   : > { %v3669_v55 = vpop.permute.xlu1 %1088  ;;  %2677 = vset.pattern.permute.xlu1 %v4589_v12  ;;  %v3672_v2 = vpop.permute.xlu0 %1123 }
 0x1be   : > { %1193 = vperm.xlu1 %2677, %v3549_v21   ;;  %v1232_v26 = vmul.f32 %v2793_v49, %v3669_v55 }
 0x1c1   : > { %v3675_v15 = vpop.permute.xlu1 %1093  ;;  %v3677_v17 = vpop.permute.xlu0 %1143 }
 0x1c2   : > { %1198 = vperm.xlu1 %2677, %v3554_v51  }
 0x1c5   : > { %v3681_v60 = vpop.permute.xlu1 %1098  ;;  %v3683_v8 = vpop.permute.xlu0 %1163 }
 0x1c6   : > { %2678 = vset.pattern.permute.xlu1 %v4564_v28 }
 0x1c7   : > { %1422 = vperm.xlu1 %2678, %v1056_v1  }
 0x1c9   : > { %v3686_v7 = vpop.permute.xlu1 %1108  ;;  %v3688_v31 = vpop.permute.xlu0 %1183 }
 0x1cb   : > { %2680 = vset.pattern.permute.xlu1 %v4589_v12 }
 0x1cc   : > { %1208 = vperm.xlu1 %2680, %v3572_v24  }
 0x1cd   : > { %v3692_v21 = vpop.permute.xlu1 %1113  ;;  %v3694_v51 = vpop.permute.xlu0 %1203 }
 0x1d0   : > { %2681 = vset.pattern.permute.xlu1 %v4564_v28 }
 0x1d1   : > { %v3698_v13 = vpop.permute.xlu1 %1118  ;;  %1427 = vperm.xlu1 %2681, %v1057_v16   ;;  %v2795_v16 = vld [vmem:[%s4546_s0 + $0x48] sm:$0xff] }
 0x1d2   : > { %v1293_v41 = vpop.permute.xlu0 %1292 }
 0x1d3   : > { %v1447_v33 = vadd.f32 %v1293_v41, %v1223_v42 }
 0x1d5   : > { %v3700_v35 = vpop.permute.xlu1 %1128  ;;  %2682 = vset.pattern.permute.xlu1 %v4589_v12  ;;  %v1511_v39 = vmax.f32 %v1447_v33, 0.0 }
 0x1d6   : > { %1213 = vperm.xlu1 %2682, %v3589_v4   ;;  %v1298_v61 = vpop.permute.xlu0 %1297  ;;  %v2785_v4 = vld [vmem:[%s4546_s0 + $0x18] sm:$0xff] }
 0x1d7   : > { %v1224_v34 = vmul.f32 %v2785_v4, %v1069_v53  ;;  %v1449_v23 = vadd.f32 %v1298_v61, %v1225_v62  ;;  %v1450_v43 = vadd.f32 %v1298_v61, %v1226_v5  ;;  %v1231_v53 = vmul.f32 %v2792_v56, %v3669_v55 }
 0x1d9   : > { %v3704_v24 = vpop.permute.xlu1 %1133  ;;  %v1448_v3 = vadd.f32 %v1293_v41, %v1224_v34  ;;  %v1230_v41 = vmul.f32 %v2795_v16, %v3662_v29  ;;  %v1514_v50 = vmax.f32 %v1450_v43, 0.0 }
 0x1da   : > { %1218 = vperm.xlu1 %2682, %v3593_v45   ;;  %v1313_v20 = vpop.permute.xlu0 %1312  ;;  %v2786_v45 = vld [vmem:[%s4546_s0] sm:$0xff] }
 0x1db   : > { %v1221_v9 = vmul.f32 %v2786_v45, %v1064_v38  ;;  %v1512_v14 = vmax.f32 %v1448_v3, 0.0  ;;  %v1455_v42 = vadd.f32 %v1313_v20, %v1231_v53  ;;  %v1456_v4 = vadd.f32 %v1313_v20, %v1232_v26  ;;  %v2796_v45 = vld [vmem:[%s4546_s0 + $0x68] sm:$0xff]  ;;  %v2798_v20 = vld [vmem:[%s4546_s0 + $0x70] sm:$0xff] }
 0x1dc   : > { %v1235_v3 = vmul.f32 %v2798_v20, %v3681_v60 }
 0x1dd   : > { %v3708_v27 = vpop.permute.xlu1 %1138 }
 0x1de   : > { %2683 = vset.pattern.permute.xlu1 %v4564_v28  ;;  %v3725_v0 = vpop.permute.xlu0 %1317 }
 0x1df   : > { %1442 = vperm.xlu1 %2683, %v1060_v25   ;;  %v1513_v25 = vmax.f32 %v1449_v23, 0.0 }
 0x1e2   : > { %v1288_v44 = vpop.permute.xlu1 %1287  ;;  %v3758_v40 = vpop.permute.xlu0 %1332 }
 0x1e3   : > { %v1445_v37 = vadd.f32 %v1288_v44, %v1221_v9  ;;  %v1446_v47 = vadd.f32 %v1288_v44, %v1222_v59  ;;  %2685 = vset.pattern.permute.xlu1 %v4589_v12  ;;  %v2791_v12 = vld [vmem:[%s4546_s0 + $0x38] sm:$0xff]  ;;  %v1234_v9 = vmul.f32 %v2796_v45, %v3675_v15 }
 0x1e4   : > { %v1228_v46 = vmul.f32 %v2791_v12, %v1079_v30  ;;  %v2794_v30 = vld [vmem:[%s4546_s0 + $0x40] sm:$0xff]  ;;  %v1520_v12 = vmax.f32 %v1456_v4, 0.0 }
 0x1e5   : > { %v1510_v57 = vmax.f32 %v1446_v47, 0.0  ;;  %v1509_v10 = vmax.f32 %v1445_v37, 0.0  ;;  %v1229_v1 = vmul.f32 %v2794_v30, %v3662_v29  ;;  %v2797_v29 = vld [vmem:[%s4546_s0 + $0x60] sm:$0xff]  ;;  %v2799_v47 = vld [vmem:[%s4546_s0 + $0x78] sm:$0xff]  ;;  %v1458_v62 = vadd.f32 %v3725_v0, %v1234_v9 }
 0x1e6   : > { %v1303_v63 = vpop.permute.xlu1 %1302  ;;  %v1233_v33 = vmul.f32 %v2797_v29, %v3675_v15  ;;  %v1236_v11 = vmul.f32 %v2799_v47, %v3681_v60  ;;  %v2800_v15 = vld [vmem:[%s4546_s0 + $0x80] sm:$0xff]  ;;  %v2801_v60 = vld [vmem:[%s4546_s0 + $0x98] sm:$0xff] }
 0x1e7   : > { %v1451_v38 = vadd.f32 %v1303_v63, %v1227_v22  ;;  %v1452_v36 = vadd.f32 %v1303_v63, %v1228_v46  ;;  %v2557_v19 = vpack.c.bf16 %v1512_v14, %v1510_v57  ;;  %v2559_v52 = vpack.c.bf16 %v1511_v39, %v1509_v10  ;;  %v1338_v57 = vpop.permute.xlu0 %1337  ;;  %v2802_v14 = vld [vmem:[%s4546_s0 + $0x88] sm:$0xff]  ;;  %v2803_v39 = vld [vmem:[%s4546_s0 + $0x90] sm:$0xff] }
 0x1e8   : > { %v1237_v18 = vmul.f32 %v2800_v15, %v3667_v58  ;;  %v1519_v22 = vmax.f32 %v1455_v42, 0.0  ;;  %v1457_v46 = vadd.f32 %v3725_v0, %v1233_v33  ;;  %v1240_v23 = vmul.f32 %v2801_v60, %v3686_v7  ;;  %v2811_v15 = vld [vmem:[%s4546_s0 + $0xc8] sm:$0xff] }
 0x1e9   : > { %v1515_v61 = vmax.f32 %v1451_v38, 0.0  ;;  %v1516_v55 = vmax.f32 %v1452_v36, 0.0  ;;  %2558 = vmatprep.subr.bf16.mxu0 %v2557_v19  ;;  %2621 = vmatprep.subr.bf16.mxu1 %v2557_v19  ;;  %v1238_v0 = vmul.f32 %v2802_v14, %v3667_v58  ;;  %v1239_v38 = vmul.f32 %v2803_v39, %v3686_v7 }
 0x1ea   : > { %v1308_v34 = vpop.permute.xlu1 %1307  ;;  %2560 = vmatpush1.bf16.msra.mxu0 %v2559_v52  ;;  %2637 = vmatpush1.bf16.msra.mxu1 %v2559_v52  ;;  %v1522_v53 = vmax.f32 %v1458_v62, 0.0  ;;  %v1464_v49 = vadd.f32 %v3758_v40, %v1240_v23  ;;  %v2804_v52 = vld [vmem:[%s4546_s0 + $0xa8] sm:$0xff]  ;;  %v1521_v58 = vmax.f32 %v1457_v46, 0.0 }
 0x1eb   : > { %v1453_v48 = vadd.f32 %v1308_v34, %v1229_v1  ;;  %v1454_v59 = vadd.f32 %v1308_v34, %v1230_v41  ;;  %v2561_v44 = vpack.c.bf16 %v1516_v55, %v1514_v50  ;;  %v2563_v37 = vpack.c.bf16 %v1515_v61, %v1513_v25  ;;  %v2805_v41 = vld [vmem:[%s4546_s0 + $0xa0] sm:$0xff]  ;;  %v2806_v55 = vld [vmem:[%s4546_s0 + $0xb0] sm:$0xff]  ;;  %v2807_v25 = vld [vmem:[%s4546_s0 + $0xb8] sm:$0xff]  ;;  %v1353_v42 = vpop.permute.xlu0 %1352 }
 0x1ec   : > { %v1242_v32 = vmul.f32 %v2804_v52, %v3692_v21  ;;  %v1463_v6 = vadd.f32 %v3758_v40, %v1239_v38  ;;  %v1241_v61 = vmul.f32 %v2805_v41, %v3692_v21  ;;  %v1243_v40 = vmul.f32 %v2806_v55, %v3698_v13  ;;  %v2808_v21 = vld [vmem:[%s4546_s0 + $0xd8] sm:$0xff]  ;;  %v2814_v38 = vld [vmem:[%s4546_s0 + $0xf0] sm:$0xff] }
 0x1ed   : > { %v1517_v54 = vmax.f32 %v1453_v48, 0.0  ;;  %v1518_v5 = vmax.f32 %v1454_v59, 0.0  ;;  %2562 = vmatprep.subr.bf16.mxu0 %v2561_v44  ;;  %2622 = vmatprep.subr.bf16.mxu1 %v2561_v44  ;;  %v1244_v50 = vmul.f32 %v2807_v25, %v3698_v13  ;;  %v1528_v34 = vmax.f32 %v1464_v49, 0.0 }
 0x1ee   : > { %v1323_v10 = vpop.permute.xlu1 %1322  ;;  %2564 = vmatpush1.bf16.msra.mxu0 %v2563_v37  ;;  %2638 = vmatpush1.bf16.msra.mxu1 %v2563_v37  ;;  %v1466_v45 = vadd.f32 %v1338_v57, %v1242_v32  ;;  %v1248_v59 = vmul.f32 %v2808_v21, %v3700_v35  ;;  %v1527_v29 = vmax.f32 %v1463_v6, 0.0  ;;  %v1465_v33 = vadd.f32 %v1338_v57, %v1241_v61  ;;  %v2809_v37 = vld [vmem:[%s4546_s0 + $0xc0] sm:$0xff] }
 0x1ef   : > { %v1459_v43 = vadd.f32 %v1323_v10, %v1235_v3  ;;  %v1460_v63 = vadd.f32 %v1323_v10, %v1236_v11  ;;  %v2565_v36 = vpack.c.bf16 %v1520_v12, %v1518_v5  ;;  %v2567_v56 = vpack.c.bf16 %v1519_v22, %v1517_v54  ;;  %v2810_v11 = vld [vmem:[%s4546_s0 + $0xd0] sm:$0xff]  ;;  %v2812_v57 = vld [vmem:[%s4546_s0 + $0xe0] sm:$0xff] }
 0x1f0   : > { %v1245_v47 = vmul.f32 %v2809_v37, %v3672_v2  ;;  %v1247_v62 = vmul.f32 %v2810_v11, %v3700_v35  ;;  %v1472_v54 = vadd.f32 %v1353_v42, %v1248_v59  ;;  %v1530_v22 = vmax.f32 %v1466_v45, 0.0  ;;  %v2813_v35 = vld [vmem:[%s4546_s0 + $0xe8] sm:$0xff] }
 0x1f1   : > { %v1523_v26 = vmax.f32 %v1459_v43, 0.0  ;;  %v1524_v19 = vmax.f32 %v1460_v63, 0.0  ;;  %2566 = vmatprep.subr.bf16.mxu0 %v2565_v36  ;;  %2623 = vmatprep.subr.bf16.mxu1 %v2565_v36  ;;  %v1249_v10 = vmul.f32 %v2812_v57, %v3704_v24  ;;  %v1250_v60 = vmul.f32 %v2813_v35, %v3704_v24  ;;  %v2819_v59 = vld [vmem:[%s4546_s0 + $0x108] sm:$0xff] }
 0x1f2   : > { %v1328_v30 = vpop.permute.xlu1 %1327  ;;  %2568 = vmatpush1.bf16.msra.mxu0 %v2567_v56  ;;  %2639 = vmatpush1.bf16.msra.mxu1 %v2567_v56  ;;  %v1529_v23 = vmax.f32 %v1465_v33, 0.0  ;;  %v1471_v43 = vadd.f32 %v1353_v42, %v1247_v62  ;;  %v1251_v36 = vmul.f32 %v2814_v38, %v3708_v27  ;;  %v2815_v56 = vld [vmem:[%s4546_s0 + $0xf8] sm:$0xff]  ;;  %v2816_v42 = vld [vmem:[%s4546_s0 + $0x110] sm:$0xff] }
 0x1f3   : > { %v1461_v7 = vadd.f32 %v1328_v30, %v1237_v18  ;;  %v1462_v1 = vadd.f32 %v1328_v30, %v1238_v0  ;;  %v2569_v16 = vpack.c.bf16 %v1524_v19, %v1522_v53  ;;  %v2571_v4 = vpack.c.bf16 %v1523_v26, %v1521_v58 }
 0x1f4   : > { %v1246_v18 = vmul.f32 %v2811_v15, %v3672_v2  ;;  %v1358_v2 = vpop.permute.xlu0 %1357  ;;  %v1252_v24 = vmul.f32 %v2815_v56, %v3708_v27  ;;  %v1536_v53 = vmax.f32 %v1472_v54, 0.0  ;;  %v1535_v58 = vmax.f32 %v1471_v43, 0.0  ;;  %v2823_v43 = vld [vmem:[%s4546_s0 + $0x138] sm:$0xff] }
 0x1f5   : > { %v1525_v9 = vmax.f32 %v1461_v7, 0.0  ;;  %v1526_v48 = vmax.f32 %v1462_v1, 0.0  ;;  %2570 = vmatprep.subr.bf16.mxu0 %v2569_v16  ;;  %2624 = vmatprep.subr.bf16.mxu1 %v2569_v16  ;;  %v1473_v26 = vadd.f32 %v1358_v2, %v1249_v10  ;;  %v1474_v19 = vadd.f32 %v1358_v2, %v1250_v60  ;;  %v2822_v60 = vld [vmem:[%s4546_s0 + $0x130] sm:$0xff] }
 0x1f6   : > { %v1343_v20 = vpop.permute.xlu1 %1342  ;;  %2572 = vmatpush1.bf16.msra.mxu0 %v2571_v4  ;;  %2640 = vmatpush1.bf16.msra.mxu1 %v2571_v4 }
 0x1f7   : > { %v1467_v3 = vadd.f32 %v1343_v20, %v1243_v40  ;;  %v1468_v44 = vadd.f32 %v1343_v20, %v1244_v50  ;;  %v2573_v13 = vpack.c.bf16 %v1528_v34, %v1526_v48  ;;  %v2575_v5 = vpack.c.bf16 %v1527_v29, %v1525_v9  ;;  %v2817_v34 = vld [vmem:[%s4546_s0 + $0x118] sm:$0xff]  ;;  %v2818_v9 = vld [vmem:[%s4546_s0 + $0x100] sm:$0xff] }
 0x1f8   : > { %v1537_v41 = vmax.f32 %v1473_v26, 0.0  ;;  %v1538_v61 = vmax.f32 %v1474_v19, 0.0  ;;  %v1253_v48 = vmul.f32 %v2818_v9, %v3677_v17  ;;  %v1373_v21 = vpop.permute.xlu0 %1372  ;;  %v1254_v29 = vmul.f32 %v2819_v59, %v3677_v17  ;;  %v2820_v17 = vld [vmem:[%s4546_s0 + $0x120] sm:$0xff]  ;;  %v2824_v26 = vld [vmem:[%s4546_s0 + $0x150] sm:$0xff] }
 0x1f9   : > { %v1531_v12 = vmax.f32 %v1467_v3, 0.0  ;;  %v1532_v46 = vmax.f32 %v1468_v44, 0.0  ;;  %2574 = vmatprep.subr.bf16.mxu0 %v2573_v13  ;;  %2625 = vmatprep.subr.bf16.mxu1 %v2573_v13 }
 0x1fa   : > { %v1348_v63 = vpop.permute.xlu1 %1347  ;;  %2576 = vmatpush1.bf16.msra.mxu0 %v2575_v5  ;;  %2641 = vmatpush1.bf16.msra.mxu1 %v2575_v5 }
 0x1fb   : > { %v1469_v14 = vadd.f32 %v1348_v63, %v1245_v47  ;;  %v1470_v0 = vadd.f32 %v1348_v63, %v1246_v18  ;;  %v2577_v39 = vpack.c.bf16 %v1532_v46, %v1530_v22  ;;  %v2579_v49 = vpack.c.bf16 %v1531_v12, %v1529_v23  ;;  %v2821_v22 = vld [vmem:[%s4546_s0 + $0x128] sm:$0xff] }
 0x1fc   : > { %v1378_v57 = vpop.permute.xlu0 %1377 }
 0x1fd   : > { %v1533_v52 = vmax.f32 %v1469_v14, 0.0  ;;  %v1534_v32 = vmax.f32 %v1470_v0, 0.0  ;;  %2578 = vmatprep.subr.bf16.mxu0 %v2577_v39  ;;  %2626 = vmatprep.subr.bf16.mxu1 %v2577_v39 }
 0x1fe   : > { %v1363_v6 = vpop.permute.xlu1 %1362  ;;  %2580 = vmatpush1.bf16.msra.mxu0 %v2579_v49  ;;  %2642 = vmatpush1.bf16.msra.mxu1 %v2579_v49 }
 0x1ff   : > { %v1475_v30 = vadd.f32 %v1363_v6, %v1251_v36  ;;  %v1476_v7 = vadd.f32 %v1363_v6, %v1252_v24  ;;  %v2581_v1 = vpack.c.bf16 %v1536_v53, %v1534_v32  ;;  %v2583_v16 = vpack.c.bf16 %v1535_v58, %v1533_v52  ;;  %v2825_v52 = vld [vmem:[%s4546_s0 + $0x158] sm:$0xff]  ;;  %v2826_v6 = vld [vmem:[%s4546_s0 + $0x140] sm:$0xff] }
 0x200   : > { %v1393_v58 = vpop.permute.xlu0 %1392 }
 0x201   : > { %v1539_v55 = vmax.f32 %v1475_v30, 0.0  ;;  %v1540_v27 = vmax.f32 %v1476_v7, 0.0  ;;  %2582 = vmatprep.subr.bf16.mxu0 %v2581_v1  ;;  %2627 = vmatprep.subr.bf16.mxu1 %v2581_v1  ;;  %v1261_v30 = vmul.f32 %v2826_v6, %v3683_v8  ;;  %v2827_v7 = vld [vmem:[%s4546_s0 + $0x148] sm:$0xff] }
 0x202   : > { %2584 = vmatpush1.bf16.msra.mxu0 %v2583_v16  ;;  %2643 = vmatpush1.bf16.msra.mxu1 %v2583_v16  ;;  %v1262_v1 = vmul.f32 %v2827_v7, %v3683_v8  ;;  %v2828_v8 = vld [vmem:[%s4546_s0 + $0x160] sm:$0xff] }
 0x203   : > { %v1149_v40 = vpop.permute.xlu1 %1148  ;;  %v2585_v25 = vpack.c.bf16 %v1540_v27, %v1538_v61  ;;  %v2587_v50 = vpack.c.bf16 %v1539_v55, %v1537_v41 }
 0x204   : > { %v1255_v4 = vmul.f32 %v2816_v42, %v1149_v40  ;;  %v1256_v45 = vmul.f32 %v2817_v34, %v1149_v40 }
 0x205   : > { %2586 = vmatprep.subr.bf16.mxu0 %v2585_v25  ;;  %2628 = vmatprep.subr.bf16.mxu1 %v2585_v25 }
 0x206   : > { %v1479_v33 = vadd.f32 %v1373_v21, %v1255_v4  ;;  %v1480_v20 = vadd.f32 %v1373_v21, %v1256_v45  ;;  %2588 = vmatpush1.bf16.msra.mxu0 %v2587_v50  ;;  %2644 = vmatpush1.bf16.msra.mxu1 %v2587_v50 }
 0x208   : > { %v1368_v3 = vpop.permute.xlu1 %1367  ;;  %v1544_v11 = vmax.f32 %v1480_v20, 0.0  ;;  %v1543_v62 = vmax.f32 %v1479_v33, 0.0 }
 0x209   : > { %v1477_v44 = vadd.f32 %v1368_v3, %v1253_v48  ;;  %v1478_v13 = vadd.f32 %v1368_v3, %v1254_v29  ;;  %v2829_v48 = vld [vmem:[%s4546_s0 + $0x168] sm:$0xff]  ;;  %v1398_v29 = vpop.permute.xlu0 %1397  ;;  %v2830_v3 = vld [vmem:[%s4546_s0 + $0x170] sm:$0xff] }
 0x20b   : > { %v1541_v37 = vmax.f32 %v1477_v44, 0.0  ;;  %v1542_v47 = vmax.f32 %v1478_v13, 0.0  ;;  %v2831_v13 = vld [vmem:[%s4546_s0 + $0x178] sm:$0xff] }
 0x20d   : > { %v1154_v54 = vpop.permute.xlu1 %1153  ;;  %v2589_v5 = vpack.c.bf16 %v1544_v11, %v1542_v47  ;;  %v2591_v15 = vpack.c.bf16 %v1543_v62, %v1541_v37 }
 0x20e   : > { %v1257_v18 = vmul.f32 %v2820_v17, %v1154_v54  ;;  %v1258_v12 = vmul.f32 %v2821_v22, %v1154_v54 }
 0x20f   : > { %2590 = vmatprep.subr.bf16.mxu0 %v2589_v5  ;;  %2629 = vmatprep.subr.bf16.mxu1 %v2589_v5 }
 0x210   : > { %2592 = vmatpush1.bf16.msra.mxu0 %v2591_v15  ;;  %2645 = vmatpush1.bf16.msra.mxu1 %v2591_v15  ;;  %v1481_v10 = vadd.f32 %v1378_v57, %v1257_v18  ;;  %v1482_v35 = vadd.f32 %v1378_v57, %v1258_v12 }
 0x211   : > { %v1159_v46 = vpop.permute.xlu1 %1158 }
 0x212   : > { %v1259_v23 = vmul.f32 %v2822_v60, %v1159_v46  ;;  %v1260_v2 = vmul.f32 %v2823_v43, %v1159_v46  ;;  %v1546_v36 = vmax.f32 %v1482_v35, 0.0  ;;  %v1545_v56 = vmax.f32 %v1481_v10, 0.0  ;;  %v2832_v46 = vld [vmem:[%s4546_s0 + $0x190] sm:$0xff]  ;;  %v2833_v10 = vld [vmem:[%s4546_s0 + $0x198] sm:$0xff]  ;;  %v1413_v60 = vpop.permute.xlu0 %1412 }
 0x216   : > { %v1383_v63 = vpop.permute.xlu1 %1382  ;;  %v1418_v7 = vpop.permute.xlu0 %1417 }
 0x217   : > { %v1483_v14 = vadd.f32 %v1383_v63, %v1259_v23  ;;  %v1484_v0 = vadd.f32 %v1383_v63, %v1260_v2  ;;  %v2834_v23 = vld [vmem:[%s4546_s0 + $0x180] sm:$0xff]  ;;  %v2835_v2 = vld [vmem:[%s4546_s0 + $0x188] sm:$0xff] }
 0x218   : > { %v1269_v43 = vmul.f32 %v2834_v23, %v3688_v31  ;;  %v1270_v63 = vmul.f32 %v2835_v2, %v3688_v31  ;;  %v2836_v31 = vld [vmem:[%s4546_s0 + $0x1a0] sm:$0xff] }
 0x219   : > { %v1547_v39 = vmax.f32 %v1483_v14, 0.0  ;;  %v1548_v38 = vmax.f32 %v1484_v0, 0.0 }
 0x21b   : > { %v1169_v24 = vpop.permute.xlu1 %1168  ;;  %v2593_v53 = vpack.c.bf16 %v1548_v38, %v1546_v36  ;;  %v2595_v49 = vpack.c.bf16 %v1547_v39, %v1545_v56 }
 0x21c   : > { %v1263_v19 = vmul.f32 %v2824_v26, %v1169_v24  ;;  %v1264_v32 = vmul.f32 %v2825_v52, %v1169_v24 }
 0x21d   : > { %2594 = vmatprep.subr.bf16.mxu0 %v2593_v53  ;;  %2630 = vmatprep.subr.bf16.mxu1 %v2593_v53 }
 0x21e   : > { %2596 = vmatpush1.bf16.msra.mxu0 %v2595_v49  ;;  %2646 = vmatpush1.bf16.msra.mxu1 %v2595_v49  ;;  %v1487_v16 = vadd.f32 %v1393_v58, %v1263_v19  ;;  %v1488_v41 = vadd.f32 %v1393_v58, %v1264_v32  ;;  %v2837_v58 = vld [vmem:[%s4546_s0 + $0x1a8] sm:$0xff] }
 0x220   : > { %v1388_v61 = vpop.permute.xlu1 %1387  ;;  %v1552_v50 = vmax.f32 %v1488_v41, 0.0  ;;  %v1551_v42 = vmax.f32 %v1487_v16, 0.0  ;;  %v2838_v41 = vld [vmem:[%s4546_s0 + $0x1b0] sm:$0xff] }
 0x221   : > { %v1485_v55 = vadd.f32 %v1388_v61, %v1261_v30  ;;  %v1486_v27 = vadd.f32 %v1388_v61, %v1262_v1 }
 0x223   : > { %v1549_v40 = vmax.f32 %v1485_v55, 0.0  ;;  %v1550_v25 = vmax.f32 %v1486_v27, 0.0  ;;  %v2839_v55 = vld [vmem:[%s4546_s0 + $0x1b8] sm:$0xff] }
 0x225   : > { %v1174_v4 = vpop.permute.xlu1 %1173  ;;  %v2597_v34 = vpack.c.bf16 %v1552_v50, %v1550_v25  ;;  %v2599_v45 = vpack.c.bf16 %v1551_v42, %v1549_v40 }
 0x226   : > { %v1265_v9 = vmul.f32 %v2828_v8, %v1174_v4  ;;  %v1266_v21 = vmul.f32 %v2829_v48, %v1174_v4 }
 0x227   : > { %2598 = vmatprep.subr.bf16.mxu0 %v2597_v34  ;;  %2631 = vmatprep.subr.bf16.mxu1 %v2597_v34 }
 0x228   : > { %2600 = vmatpush1.bf16.msra.mxu0 %v2599_v45  ;;  %2647 = vmatpush1.bf16.msra.mxu1 %v2599_v45  ;;  %v1489_v33 = vadd.f32 %v1398_v29, %v1265_v9  ;;  %v1490_v20 = vadd.f32 %v1398_v29, %v1266_v21  ;;  %v2840_v21 = vld [vmem:[%s4546_s0 + $0x1d0] sm:$0xff]  ;;  %v2841_v29 = vld [vmem:[%s4546_s0 + $0x1d8] sm:$0xff] }
 0x229   : > { %v1179_v59 = vpop.permute.xlu1 %1178 }
 0x22a   : > { %v1267_v44 = vmul.f32 %v2830_v3, %v1179_v59  ;;  %v1268_v37 = vmul.f32 %v2831_v13, %v1179_v59  ;;  %v1554_v15 = vmax.f32 %v1490_v20, 0.0  ;;  %v1553_v17 = vmax.f32 %v1489_v33, 0.0  ;;  %v1433_v20 = vpop.permute.xlu0 %1432  ;;  %v2842_v3 = vld [vmem:[%s4546_s0 + $0x1c0] sm:$0xff]  ;;  %v2843_v13 = vld [vmem:[%s4546_s0 + $0x1c8] sm:$0xff] }
 0x22e   : > { %v1403_v47 = vpop.permute.xlu1 %1402 }
 0x22f   : > { %v1491_v11 = vadd.f32 %v1403_v47, %v1267_v44  ;;  %v1492_v62 = vadd.f32 %v1403_v47, %v1268_v37  ;;  %v1277_v44 = vmul.f32 %v2842_v3, %v3694_v51  ;;  %v1278_v37 = vmul.f32 %v2843_v13, %v3694_v51  ;;  %v2844_v51 = vld [vmem:[%s4546_s0 + $0x1e0] sm:$0xff]  ;;  %v1588_v3 = vld [vmem:[%s3748_s14 + $0x78] sm:$0xff]  ;;  %v1587_v13 = vld [vmem:[%s3748_s14 + $0x70] sm:$0xff] }
 0x231   : > { %v1555_v54 = vmax.f32 %v1491_v11, 0.0  ;;  %v1556_v5 = vmax.f32 %v1492_v62, 0.0 }
 0x233   : > { %v1189_v18 = vpop.permute.xlu1 %1188  ;;  %v2601_v22 = vpack.c.bf16 %v1556_v5, %v1554_v15  ;;  %v2603_v12 = vpack.c.bf16 %v1555_v54, %v1553_v17 }
 0x234   : > { %v1271_v57 = vmul.f32 %v2832_v46, %v1189_v18  ;;  %v1272_v35 = vmul.f32 %v2833_v10, %v1189_v18 }
 0x235   : > { %2602 = vmatprep.subr.bf16.mxu0 %v2601_v22  ;;  %2632 = vmatprep.subr.bf16.mxu1 %v2601_v22 }
 0x236   : > { %2604 = vmatpush1.bf16.msra.mxu0 %v2603_v12  ;;  %2648 = vmatpush1.bf16.msra.mxu1 %v2603_v12  ;;  %v1495_v14 = vadd.f32 %v1413_v60, %v1271_v57  ;;  %v1496_v0 = vadd.f32 %v1413_v60, %v1272_v35  ;;  %v2845_v35 = vld [vmem:[%s4546_s0 + $0x1e8] sm:$0xff] }
 0x238   : > { %v1408_v39 = vpop.permute.xlu1 %1407  ;;  %v1560_v53 = vmax.f32 %v1496_v0, 0.0  ;;  %v1559_v49 = vmax.f32 %v1495_v14, 0.0  ;;  %v2846_v14 = vld [vmem:[%s4546_s0 + $0x1f0] sm:$0xff] }
 0x239   : > { %v1493_v38 = vadd.f32 %v1408_v39, %v1269_v43  ;;  %v1494_v36 = vadd.f32 %v1408_v39, %v1270_v63  ;;  %v1438_v43 = vpop.permute.xlu0 %1437  ;;  %v2847_v39 = vld [vmem:[%s4546_s0 + $0x1f8] sm:$0xff] }
 0x23b   : > { %v1557_v56 = vmax.f32 %v1493_v38, 0.0  ;;  %v1558_v24 = vmax.f32 %v1494_v36, 0.0 }
 0x23d   : > { %v1194_v26 = vpop.permute.xlu1 %1193  ;;  %v2605_v19 = vpack.c.bf16 %v1560_v53, %v1558_v24  ;;  %v2607_v52 = vpack.c.bf16 %v1559_v49, %v1557_v56 }
 0x23e   : > { %v1273_v32 = vmul.f32 %v2836_v31, %v1194_v26  ;;  %v1274_v6 = vmul.f32 %v2837_v58, %v1194_v26  ;;  %v1589_v58 = vld [vmem:[%s3748_s14 + $0x80] sm:$0xff] }
 0x23f   : > { %2606 = vmatprep.subr.bf16.mxu0 %v2605_v19  ;;  %2633 = vmatprep.subr.bf16.mxu1 %v2605_v19 }
 0x240   : > { %2608 = vmatpush1.bf16.msra.mxu0 %v2607_v52  ;;  %2649 = vmatpush1.bf16.msra.mxu1 %v2607_v52  ;;  %v1497_v1 = vadd.f32 %v1418_v7, %v1273_v32  ;;  %v1498_v16 = vadd.f32 %v1418_v7, %v1274_v6  ;;  %v1573_v32 = vld [vmem:[%s3748_s14] sm:$0xff]  ;;  %v1576_v6 = vld [vmem:[%s3748_s14 + $0x18] sm:$0xff]  ;;  %v1575_v7 = vld [vmem:[%s3748_s14 + $0x10] sm:$0xff] }
 0x241   : > { %v1199_v30 = vpop.permute.xlu1 %1198 }
 0x242   : > { %v1275_v61 = vmul.f32 %v2838_v41, %v1199_v30  ;;  %v1276_v27 = vmul.f32 %v2839_v55, %v1199_v30  ;;  %v1561_v42 = vmax.f32 %v1497_v1, 0.0  ;;  %v1562_v4 = vmax.f32 %v1498_v16, 0.0  ;;  %v1592_v30 = vld [vmem:[%s3748_s14 + $0x98] sm:$0xff]  ;;  %v1591_v1 = vld [vmem:[%s3748_s14 + $0x90] sm:$0xff]  ;;  %v1578_v16 = vld [vmem:[%s3748_s14 + $0x28] sm:$0xff] }
 0x243   : > { %v1594_v41 = vld [vmem:[%s3748_s14 + $0xa8] sm:$0xff]  ;;  %v1593_v55 = vld [vmem:[%s3748_s14 + $0xa0] sm:$0xff] }
 0x246   : > { %v1423_v40 = vpop.permute.xlu1 %1422 }
 0x247   : > { %v1499_v25 = vadd.f32 %v1423_v40, %v1275_v61  ;;  %v1500_v50 = vadd.f32 %v1423_v40, %v1276_v27  ;;  %v1577_v61 = vld [vmem:[%s3748_s14 + $0x20] sm:$0xff]  ;;  %v1596_v27 = vld [vmem:[%s3748_s14 + $0xb8] sm:$0xff] }
 0x248   : > { %v1580_v40 = vld [vmem:[%s3748_s14 + $0x38] sm:$0xff] }
 0x249   : > { %v1563_v34 = vmax.f32 %v1499_v25, 0.0  ;;  %v1564_v45 = vmax.f32 %v1500_v50, 0.0  ;;  %v1595_v25 = vld [vmem:[%s3748_s14 + $0xb0] sm:$0xff] }
 0x24a   : > { %v1579_v50 = vld [vmem:[%s3748_s14 + $0x30] sm:$0xff] }
 0x24b   : > { %v1209_v8 = vpop.permute.xlu1 %1208  ;;  %v2609_v9 = vpack.c.bf16 %v1564_v45, %v1562_v4  ;;  %v2611_v48 = vpack.c.bf16 %v1563_v34, %v1561_v42  ;;  %v1582_v42 = vld [vmem:[%s3748_s14 + $0x48] sm:$0xff]  ;;  %v1581_v34 = vld [vmem:[%s3748_s14 + $0x40] sm:$0xff] }
 0x24c   : > { %v1279_v59 = vmul.f32 %v2840_v21, %v1209_v8  ;;  %v1280_v33 = vmul.f32 %v2841_v29, %v1209_v8  ;;  %v1598_v4 = vld [vmem:[%s3748_s14 + $0xc8] sm:$0xff]  ;;  %v1597_v45 = vld [vmem:[%s3748_s14 + $0xc0] sm:$0xff]  ;;  %v1584_v8 = vld [vmem:[%s3748_s14 + $0x58] sm:$0xff] }
 0x24d   : > { %2610 = vmatprep.subr.bf16.mxu0 %v2609_v9  ;;  %2634 = vmatprep.subr.bf16.mxu1 %v2609_v9  ;;  %v1600_v9 = vld [vmem:[%s3748_s14 + $0xd8] sm:$0xff]  ;;  %v1599_v21 = vld [vmem:[%s3748_s14 + $0xd0] sm:$0xff]  ;;  %v1602_v29 = vld [vmem:[%s3748_s14 + $0xe8] sm:$0xff] }
 0x24e   : > { %2612 = vmatpush1.bf16.msra.mxu0 %v2611_v48  ;;  %2650 = vmatpush1.bf16.msra.mxu1 %v2611_v48  ;;  %v1503_v47 = vadd.f32 %v1433_v20, %v1279_v59  ;;  %v1504_v11 = vadd.f32 %v1433_v20, %v1280_v33  ;;  %v1583_v48 = vld [vmem:[%s3748_s14 + $0x50] sm:$0xff]  ;;  %v1586_v59 = vld [vmem:[%s3748_s14 + $0x68] sm:$0xff]  ;;  %v1585_v33 = vld [vmem:[%s3748_s14 + $0x60] sm:$0xff] }
 0x24f   : > { %v1601_v20 = vld [vmem:[%s3748_s14 + $0xe0] sm:$0xff] }
 0x250   : > { %v1428_v62 = vpop.permute.xlu1 %1427  ;;  %v1567_v15 = vmax.f32 %v1503_v47, 0.0  ;;  %v1568_v17 = vmax.f32 %v1504_v11, 0.0 }
 0x251   : > { %v1501_v54 = vadd.f32 %v1428_v62, %v1277_v44  ;;  %v1502_v5 = vadd.f32 %v1428_v62, %v1278_v37  ;;  %v1604_v44 = vld [vmem:[%s3748_s14 + $0xf8] sm:$0xff]  ;;  %v1603_v37 = vld [vmem:[%s3748_s14 + $0xf0] sm:$0xff] }
 0x253   : > { %v1565_v18 = vmax.f32 %v1501_v54, 0.0  ;;  %v1566_v22 = vmax.f32 %v1502_v5, 0.0 }
 0x255   : > { %v1214_v12 = vpop.permute.xlu1 %1213  ;;  %v2613_v46 = vpack.c.bf16 %v1568_v17, %v1566_v22  ;;  %v2615_v57 = vpack.c.bf16 %v1567_v15, %v1565_v18 }
 0x256   : > { %v1281_v10 = vmul.f32 %v2844_v51, %v1214_v12  ;;  %v1282_v60 = vmul.f32 %v2845_v35, %v1214_v12 }
 0x257   : > { %2614 = vmatprep.subr.bf16.mxu0 %v2613_v46  ;;  %2635 = vmatprep.subr.bf16.mxu1 %v2613_v46 }
 0x258   : > { %2616 = vmatpush1.bf16.msra.mxu0 %v2615_v57  ;;  %2651 = vmatpush1.bf16.msra.mxu1 %v2615_v57  ;;  %v1505_v2 = vadd.f32 %v1438_v43, %v1281_v10  ;;  %v1506_v63 = vadd.f32 %v1438_v43, %v1282_v60 }
 0x259   : > { %v1219_v23 = vpop.permute.xlu1 %1218 }
 0x25a   : > { %v1283_v0 = vmul.f32 %v2846_v14, %v1219_v23  ;;  %v1284_v38 = vmul.f32 %v2847_v39, %v1219_v23  ;;  %v1569_v53 = vmax.f32 %v1505_v2, 0.0  ;;  %v1570_v49 = vmax.f32 %v1506_v63, 0.0 }
 0x25e   : > { %v1443_v36 = vpop.permute.xlu1 %1442 }
 0x25f   : > { %v1507_v56 = vadd.f32 %v1443_v36, %v1283_v0  ;;  %v1508_v24 = vadd.f32 %v1443_v36, %v1284_v38 }
 0x261   : > { %v1571_v26 = vmax.f32 %v1507_v56, 0.0  ;;  %v1572_v19 = vmax.f32 %v1508_v24, 0.0 }
 0x263   : > { %v2617_v52 = vpack.c.bf16 %v1572_v19, %v1570_v49  ;;  %v2619_v31 = vpack.c.bf16 %v1571_v26, %v1569_v53 }
 0x265   : > { %2618 = vmatprep.subr.bf16.mxu0 %v2617_v52  ;;  %2636 = vmatprep.subr.bf16.mxu1 %v2617_v52 }
 0x266   : > { %2620 = vmatpush1.bf16.msra.mxu0 %v2619_v31  ;;  %2652 = vmatpush1.bf16.msra.mxu1 %v2619_v31 }
 0x269   : > { %1670 = vmatmul.mubr.f32.vlgmr.msra.gmra.mrb[0].mxu0 %v1573_v32  ;;  %1718 = vmatmul.mubr.f32.vlgmr.msra.gmra.mrb[0].mxu1 %v1589_v58 }
 0x26a   : > { %1675 = vmatprep.mubr.f32.mxu0 %v1576_v6  ;;  %1723 = vmatprep.mubr.f32.mxu1 %v1592_v30 }
 0x26d   : > { %1676 = vmatmul.mubr.f32.gmra.mrb[2].mxu0 %v1575_v7  ;;  %1724 = vmatmul.mubr.f32.gmra.mrb[2].mxu1 %v1591_v1 }
 0x26e   : > { %1681 = vmatprep.mubr.f32.mxu0 %v1578_v16  ;;  %1729 = vmatprep.mubr.f32.mxu1 %v1594_v41 }
 0x271   : > { %1682 = vmatmul.mubr.f32.gmra.mrb[4].mxu0 %v1577_v61  ;;  %1730 = vmatmul.mubr.f32.gmra.mrb[4].mxu1 %v1593_v55 }
 0x272   : > { %1735 = vmatprep.mubr.f32.mxu1 %v1596_v27  ;;  %1687 = vmatprep.mubr.f32.mxu0 %v1580_v40 }
 0x275   : > { %1736 = vmatmul.mubr.f32.gmra.mrb[6].mxu1 %v1595_v25  ;;  %1688 = vmatmul.mubr.f32.gmra.mrb[6].mxu0 %v1579_v50 }
 0x276   : > { %1693 = vmatprep.mubr.f32.mxu0 %v1582_v42  ;;  %1741 = vmatprep.mubr.f32.mxu1 %v1598_v4 }
 0x279   : > { %1694 = vmatmul.mubr.f32.gmra.mrb[8].mxu0 %v1581_v34  ;;  %1742 = vmatmul.mubr.f32.gmra.mrb[8].mxu1 %v1597_v45 }
 0x27a   : > { %1699 = vmatprep.mubr.f32.mxu0 %v1584_v8  ;;  %1747 = vmatprep.mubr.f32.mxu1 %v1600_v9 }
 0x27d   : > { %1700 = vmatmul.mubr.f32.gmra.mrb[10].mxu0 %v1583_v48  ;;  %1748 = vmatmul.mubr.f32.gmra.mrb[10].mxu1 %v1599_v21 }
 0x27e   : > { %1705 = vmatprep.mubr.f32.mxu0 %v1586_v59  ;;  %1753 = vmatprep.mubr.f32.mxu1 %v1602_v29 }
 0x281   : > { %1706 = vmatmul.mubr.f32.gmra.mrb[12].mxu0 %v1585_v33  ;;  %1754 = vmatmul.mubr.f32.gmra.mrb[12].mxu1 %v1601_v20 }
 0x282   : > { %1711 = vmatprep.mubr.f32.mxu0 %v1588_v3  ;;  %1759 = vmatprep.mubr.f32.mxu1 %v1604_v44 }
 0x285   : > { %1712 = vmatmul.mubr.f32.gmra.mrb[14].mxu0 %v1587_v13  ;;  %1760 = vmatmul.mubr.f32.gmra.mrb[14].mxu1 %v1603_v37 }
 0x33c   : > { %v3995_v47 = vpop.f32.mrb[0].mxu0  ;;  %v3997_v11 = vpop.f32.mrb[0].mxu1 }
 0x33d   : > { %v1673_v62 = vpop.f32.mrb[1].mxu0  ;;  %v1721_v54 = vpop.f32.mrb[1].mxu1  ;;  %v1894_v32 = vmul.f32 %v3995_v47, %v3995_v47  ;;  %v1910_v27 = vmul.f32 %v3997_v11, %v3997_v11 }
 0x33e   : > { %1767 = vst.msk [vmem:[%s3993_s26 + $0x8] sm:$0xff] %vm292_vm0, %v1673_v62  ;;  %1783 = vst.msk [vmem:[%s3993_s26 + $0x88] sm:$0xff] %vm292_vm0, %v1721_v54 }
 0x340   : > { %v4003_v5 = vpop.f32.mrb[2].mxu0  ;;  %v4005_v15 = vpop.f32.mrb[2].mxu1 }
 0x341   : > { %v1679_v17 = vpop.f32.mrb[3].mxu0  ;;  %v1727_v18 = vpop.f32.mrb[3].mxu1  ;;  %v1896_v40 = vmul.f32 %v4003_v5, %v4003_v5  ;;  %v1912_v21 = vmul.f32 %v4005_v15, %v4005_v15 }
 0x342   : > { %1769 = vst.msk [vmem:[%s3993_s26 + $0x18] sm:$0xff] %vm292_vm0, %v1679_v17  ;;  %1785 = vst.msk [vmem:[%s3993_s26 + $0x98] sm:$0xff] %vm292_vm0, %v1727_v18 }
 0x344   : > { %v4011_v22 = vpop.f32.mrb[4].mxu0  ;;  %v4013_v12 = vpop.f32.mrb[4].mxu1 }
 0x345   : > { %v4016_v46 = vld [vmem:[%s3993_s26 + $0x8] sm:$0xff]  ;;  %v1685_v57 = vpop.f32.mrb[5].mxu0  ;;  %v1733_v10 = vpop.f32.mrb[5].mxu1 }
 0x346   : > { %v4019_v51 = vld [vmem:[%s3993_s26 + $0x88] sm:$0xff]  ;;  %v1830_v35 = vsel %vm292_vm0, %v4016_v46, 0.0  ;;  %1771 = vst.msk [vmem:[%s3993_s26 + $0x28] sm:$0xff] %vm292_vm0, %v1685_v57  ;;  %1787 = vst.msk [vmem:[%s3993_s26 + $0xa8] sm:$0xff] %vm292_vm0, %v1733_v10  ;;  %v1895_v2 = vmul.f32 %v4016_v46, %v4016_v46 }
 0x347   : > { %v1831_v60 = vadd.f32 %v1830_v35, %v3995_v47  ;;  %v1862_v23 = vsel %vm292_vm0, %v4019_v51, 0.0  ;;  %v1911_v26 = vmul.f32 %v4019_v51, %v4019_v51 }
 0x348   : > { %v4030_v43 = vpop.f32.mrb[6].mxu1  ;;  %v4034_v63 = vpop.f32.mrb[6].mxu0  ;;  %v1863_v56 = vadd.f32 %v1862_v23, %v3997_v11  ;;  %v1926_v53 = vsel %vm292_vm0, %v1895_v2, 0.0 }
 0x349   : > { %1832 = vadd.xlane.f32.xlu0 %v1831_v60  ;;  %v4037_v14 = vld [vmem:[%s3993_s26 + $0x18] sm:$0xff]  ;;  %v1739_v0 = vpop.f32.mrb[7].mxu1  ;;  %v1691_v38 = vpop.f32.mrb[7].mxu0  ;;  %v1927_v30 = vadd.f32 %v1926_v53, %v1894_v32  ;;  %v1958_v1 = vsel %vm292_vm0, %v1911_v26, 0.0  ;;  %v1900_v2 = vmul.f32 %v4034_v63, %v4034_v63  ;;  %v1914_v26 = vmul.f32 %v4013_v12, %v4013_v12 }
 0x34a   : > { %v4040_v39 = vld [vmem:[%s3993_s26 + $0x98] sm:$0xff]  ;;  %v1834_v36 = vsel %vm292_vm0, %v4037_v14, 0.0  ;;  %1789 = vst.msk [vmem:[%s3993_s26 + $0xb8] sm:$0xff] %vm292_vm0, %v1739_v0  ;;  %1773 = vst.msk [vmem:[%s3993_s26 + $0x38] sm:$0xff] %vm292_vm0, %v1691_v38  ;;  %v1897_v19 = vmul.f32 %v4037_v14, %v4037_v14  ;;  %v1959_v4 = vadd.f32 %v1958_v1, %v1910_v27 }
 0x34b   : > { %v1835_v24 = vadd.f32 %v1834_v36, %v4003_v5  ;;  %v1866_v49 = vsel %vm292_vm0, %v4040_v39, 0.0  ;;  %v1913_v41 = vmul.f32 %v4040_v39, %v4040_v39 }
 0x34c   : > { %v4057_v52 = vpop.f32.mrb[8].mxu0  ;;  %v4059_v31 = vpop.f32.mrb[8].mxu1  ;;  %v1867_v7 = vadd.f32 %v1866_v49, %v4005_v15  ;;  %v1930_v16 = vsel %vm292_vm0, %v1897_v19, 0.0  ;;  %v1916_v19 = vmul.f32 %v4030_v43, %v4030_v43 }
 0x34d   : > { %1864 = vadd.xlane.f32.xlu0 %v1863_v56  ;;  %1836 = vadd.xlane.f32.xlu1 %v1835_v24  ;;  %v1697_v58 = vpop.f32.mrb[9].mxu0  ;;  %v1745_v6 = vpop.f32.mrb[9].mxu1  ;;  %v4081_v25 = vld [vmem:[%s3993_s26 + $0x28] sm:$0xff]  ;;  %v1931_v34 = vadd.f32 %v1930_v16, %v1896_v40  ;;  %v1962_v45 = vsel %vm292_vm0, %v1913_v41, 0.0  ;;  %v1898_v24 = vmul.f32 %v4011_v22, %v4011_v22 }
 0x34e   : > { %1775 = vst.msk [vmem:[%s3993_s26 + $0x48] sm:$0xff] %vm292_vm0, %v1697_v58  ;;  %1791 = vst.msk [vmem:[%s3993_s26 + $0xc8] sm:$0xff] %vm292_vm0, %v1745_v6  ;;  %v1838_v8 = vsel %vm292_vm0, %v4081_v25, 0.0  ;;  %v4100_v29 = vld [vmem:[%s3993_s26 + $0xa8] sm:$0xff]  ;;  %v1963_v44 = vadd.f32 %v1962_v45, %v1912_v21  ;;  %v1899_v54 = vmul.f32 %v4081_v25, %v4081_v25 }
 0x34f   : > { %v1839_v13 = vadd.f32 %v1838_v8, %v4011_v22  ;;  %v1870_v62 = vsel %vm292_vm0, %v4100_v29, 0.0  ;;  %v1915_v36 = vmul.f32 %v4100_v29, %v4100_v29 }
 0x350   : > { %v4072_v61 = vpop.f32.mrb[10].mxu0  ;;  %v4074_v55 = vpop.f32.mrb[10].mxu1  ;;  %v1871_v23 = vadd.f32 %v1870_v62, %v4013_v12  ;;  %v1934_v0 = vsel %vm292_vm0, %v1899_v54, 0.0 }
 0x351   : > { %4601 = vst [vmem:[#allocation11_spill] sm:$0xff] %v4072_v61  ;;  %4602 = vst [vmem:[#allocation3_spill] sm:$0xff] %v4074_v55  ;;  %1928 = vadd.xlane.f32.xlu0 %v1927_v30  ;;  %1868 = vadd.xlane.f32.xlu1 %v1867_v7  ;;  %v1703_v50 = vpop.f32.mrb[11].mxu0  ;;  %v1751_v42 = vpop.f32.mrb[11].mxu1  ;;  %v4097_v59 = vld [vmem:[%s3993_s26 + $0xb8] sm:$0xff]  ;;  %v1935_v53 = vadd.f32 %v1934_v0, %v1898_v24  ;;  %v1966_v32 = vsel %vm292_vm0, %v1915_v36, 0.0  ;;  %v1918_v36 = vmul.f32 %v4059_v31, %v4059_v31 }
 0x352   : > { %1777 = vst.msk [vmem:[%s3993_s26 + $0x58] sm:$0xff] %vm292_vm0, %v1703_v50  ;;  %1793 = vst.msk [vmem:[%s3993_s26 + $0xd8] sm:$0xff] %vm292_vm0, %v1751_v42  ;;  %v4103_v33 = vld [vmem:[%s3993_s26 + $0x38] sm:$0xff]  ;;  %v1874_v37 = vsel %vm292_vm0, %v4097_v59, 0.0  ;;  %v1917_v56 = vmul.f32 %v4097_v59, %v4097_v59  ;;  %v1967_v30 = vadd.f32 %v1966_v32, %v1914_v26 }
 0x353   : > { %v1901_v17 = vmul.f32 %v4103_v33, %v4103_v33  ;;  %v1875_v60 = vadd.f32 %v1874_v37, %v4030_v43  ;;  %v1842_v1 = vsel %vm292_vm0, %v4103_v33, 0.0 }
 0x354   : > { %v4090_v9 = vpop.f32.mrb[12].mxu0  ;;  %v4092_v48 = vpop.f32.mrb[12].mxu1  ;;  %v1970_v58 = vsel %vm292_vm0, %v1917_v56, 0.0  ;;  %v1843_v40 = vadd.f32 %v1842_v1, %v4034_v63 }
 0x355   : > { %4603 = vst [vmem:[#allocation4_spill] sm:$0xff] %v4090_v9  ;;  %4604 = vst [vmem:[#allocation2_spill] sm:$0xff] %v4092_v48  ;;  %1960 = vadd.xlane.f32.xlu0 %v1959_v4  ;;  %1932 = vadd.xlane.f32.xlu1 %v1931_v34  ;;  %v1709_v20 = vpop.f32.mrb[13].mxu0  ;;  %v1757_v3 = vpop.f32.mrb[13].mxu1  ;;  %v1938_v38 = vsel %vm292_vm0, %v1901_v17, 0.0  ;;  %v1971_v7 = vadd.f32 %v1970_v58, %v1916_v19  ;;  %v4152_v41 = vld [vmem:[%s3993_s26 + $0x48] sm:$0xff]  ;;  %v1902_v17 = vmul.f32 %v4057_v52, %v4057_v52 }
 0x356   : > { %1779 = vst.msk [vmem:[%s3993_s26 + $0x68] sm:$0xff] %vm292_vm0, %v1709_v20  ;;  %1795 = vst.msk [vmem:[%s3993_s26 + $0xe8] sm:$0xff] %vm292_vm0, %v1757_v3  ;;  %v1939_v49 = vadd.f32 %v1938_v38, %v1900_v2  ;;  %v1846_v42 = vsel %vm292_vm0, %v4152_v41, 0.0  ;;  %v4166_v45 = vld [vmem:[%s3993_s26 + $0xc8] sm:$0xff]  ;;  %v1904_v20 = vmul.f32 %v4072_v61, %v4072_v61 }
 0x357   : > { %v1847_v8 = vadd.f32 %v1846_v42, %v4057_v52  ;;  %v1878_v3 = vsel %vm292_vm0, %v4166_v45, 0.0 }
 0x358   : > { %v4118_v18 = vpop.f32.mrb[14].mxu0  ;;  %v4120_v57 = vpop.f32.mrb[14].mxu1  ;;  %v1879_v62 = vadd.f32 %v1878_v3, %v4059_v31 }
 0x359   : > { %4605 = vst [vmem:[#allocation6_spill] sm:$0xff] %v4118_v18  ;;  %4606 = vst [vmem:[#allocation5_spill] sm:$0xff] %v4120_v57  ;;  %1964 = vadd.xlane.f32.xlu1 %v1963_v44  ;;  %1840 = vadd.xlane.f32.xlu0 %v1839_v13  ;;  %v1715_v10 = vpop.f32.mrb[15].mxu0  ;;  %v1763_v35 = vpop.f32.mrb[15].mxu1  ;;  %v4145_v6 = vld [vmem:[%s3993_s26 + $0x58] sm:$0xff]  ;;  %v1903_v13 = vmul.f32 %v4152_v41, %v4152_v41  ;;  %v1924_v3 = vmul.f32 %v4120_v57, %v4120_v57 }
 0x35a   : > { %1781 = vst.msk [vmem:[%s3993_s26 + $0x78] sm:$0xff] %vm292_vm0, %v1715_v10  ;;  %1797 = vst.msk [vmem:[%s3993_s26 + $0xf8] sm:$0xff] %vm292_vm0, %v1763_v35  ;;  %v1850_v16 = vsel %vm292_vm0, %v4145_v6, 0.0  ;;  %v4155_v27 = vld [vmem:[%s3993_s26 + $0xd8] sm:$0xff]  ;;  %v1905_v34 = vmul.f32 %v4145_v6, %v4145_v6  ;;  %v1920_v10 = vmul.f32 %v4074_v55, %v4074_v55 }
 0x35b   : > { %4607 = vst [vmem:[#allocation8_spill] sm:$0xff] %v4145_v6  ;;  %4608 = vst [vmem:[#allocation9_spill] sm:$0xff] %v4155_v27  ;;  %v1851_v50 = vadd.f32 %v1850_v16, %v4072_v61  ;;  %v1882_v4 = vsel %vm292_vm0, %v4155_v27, 0.0  ;;  %v1921_v37 = vmul.f32 %v4155_v27, %v4155_v27  ;;  %v1942_v35 = vsel %vm292_vm0, %v1903_v13, 0.0 }
 0x35c   : > { %v1883_v21 = vadd.f32 %v1882_v4, %v4074_v55  ;;  %v1946_v44 = vsel %vm292_vm0, %v1905_v34, 0.0  ;;  %v1943_v0 = vadd.f32 %v1942_v35, %v1902_v17  ;;  %v1922_v17 = vmul.f32 %v4092_v48, %v4092_v48 }
 0x35d   : > { %1876 = vadd.xlane.f32.xlu1 %v1875_v60  ;;  %1872 = vadd.xlane.f32.xlu0 %v1871_v23  ;;  %v1947_v54 = vadd.f32 %v1946_v44, %v1904_v20  ;;  %v1978_v60 = vsel %vm292_vm0, %v1921_v37, 0.0  ;;  %v1919_v23 = vmul.f32 %v4166_v45, %v4166_v45  ;;  %v1906_v20 = vmul.f32 %v4090_v9, %v4090_v9 }
 0x35e   : > { %v1979_v38 = vadd.f32 %v1978_v60, %v1920_v10 }
 0x35f   : > { %v1974_v56 = vsel %vm292_vm0, %v1919_v23, 0.0 }
 0x360   : > { %v1975_v26 = vadd.f32 %v1974_v56, %v1918_v36 }
 0x361   : > { %1936 = vadd.xlane.f32.xlu0 %v1935_v53  ;;  %1940 = vadd.xlane.f32.xlu1 %v1939_v49  ;;  %v4189_v2 = vld [vmem:[%s3993_s26 + $0x78] sm:$0xff]  ;;  %v4197_v53 = vld [vmem:[%s3993_s26 + $0x68] sm:$0xff] }
 0x362   : > { %4609 = vst [vmem:[#allocation7_spill] sm:$0xff] %v4189_v2  ;;  %v1858_v24 = vsel %vm292_vm0, %v4189_v2, 0.0  ;;  %4610 = vst [vmem:[#allocation12_spill] sm:$0xff] %v4197_v53  ;;  %v4200_v49 = vld [vmem:[%s3993_s26 + $0xf8] sm:$0xff]  ;;  %v1854_v32 = vsel %vm292_vm0, %v4197_v53, 0.0  ;;  %v1907_v4 = vmul.f32 %v4197_v53, %v4197_v53 }
 0x363   : > { %4611 = vst [vmem:[#allocation10_spill] sm:$0xff] %v4200_v49  ;;  %v1859_v19 = vadd.f32 %v1858_v24, %v4118_v18  ;;  %v1890_v58 = vsel %vm292_vm0, %v4200_v49, 0.0  ;;  %v1855_v1 = vadd.f32 %v1854_v32, %v4090_v9  ;;  %v1925_v34 = vmul.f32 %v4200_v49, %v4200_v49 }
 0x364   : > { %v1891_v16 = vadd.f32 %v1890_v58, %v4120_v57  ;;  %v1950_v44 = vsel %vm292_vm0, %v1907_v4, 0.0 }
 0x365   : > { %1968 = vadd.xlane.f32.xlu0 %v1967_v30  ;;  %1972 = vadd.xlane.f32.xlu1 %v1971_v7  ;;  %v1909_v30 = vmul.f32 %v4189_v2, %v4189_v2  ;;  %v4210_v7 = vld [vmem:[%s3993_s26 + $0xe8] sm:$0xff]  ;;  %v1986_v13 = vsel %vm292_vm0, %v1925_v34, 0.0 }
 0x366   : > { %4612 = vst [vmem:[#allocation13_spill] sm:$0xff] %v4210_v7  ;;  %v1923_v37 = vmul.f32 %v4210_v7, %v4210_v7  ;;  %v4357_v2 = vld [vmem:[%s4251_s30 + $0x68] sm:$0xff] }
 0x367   : > { %v1954_v42 = vsel %vm292_vm0, %v1909_v30, 0.0 }
 0x368   : > { %v1982_v10 = vsel %vm292_vm0, %v1923_v37, 0.0 }
 0x369   : > { %1844 = vadd.xlane.f32.xlu0 %v1843_v40  ;;  %1852 = vadd.xlane.f32.xlu1 %v1851_v50  ;;  %v1908_v40 = vmul.f32 %v4118_v18, %v4118_v18  ;;  %v1886_v50 = vsel %vm292_vm0, %v4210_v7, 0.0  ;;  %v1983_v35 = vadd.f32 %v1982_v10, %v1922_v17 }
 0x36d   : > { %1848 = vadd.xlane.f32.xlu0 %v1847_v8  ;;  %1884 = vadd.xlane.f32.xlu1 %v1883_v21  ;;  %v1887_v8 = vadd.f32 %v1886_v50, %v4092_v48  ;;  %v1955_v21 = vadd.f32 %v1954_v42, %v1908_v40 }
 0x371   : > { %1880 = vadd.xlane.f32.xlu0 %v1879_v62  ;;  %1948 = vadd.xlane.f32.xlu1 %v1947_v54  ;;  %v1951_v62 = vadd.f32 %v1950_v44, %v1906_v20  ;;  %v1987_v54 = vadd.f32 %v1986_v13, %v1924_v3 }
 0x375   : > { %1944 = vadd.xlane.f32.xlu0 %v1943_v0  ;;  %1980 = vadd.xlane.f32.xlu1 %v1979_v38 }
 0x379   : > { %1976 = vadd.xlane.f32.xlu0 %v1975_v26  ;;  %1860 = vadd.xlane.f32.xlu1 %v1859_v19 }
 0x37d   : > { %1856 = vadd.xlane.f32.xlu0 %v1855_v1  ;;  %1892 = vadd.xlane.f32.xlu1 %v1891_v16 }
 0x381   : > { %1888 = vadd.xlane.f32.xlu0 %v1887_v8  ;;  %1956 = vadd.xlane.f32.xlu1 %v1955_v21 }
 0x385   : > { %1952 = vadd.xlane.f32.xlu0 %v1951_v62  ;;  %1988 = vadd.xlane.f32.xlu1 %v1987_v54 }
 0x389   : > { %1984 = vadd.xlane.f32.xlu0 %v1983_v35 }
 0x3d6   : > { %v1833_v60 = vpop.xlane.xlu0 %1832 }
 0x3d7   : > { %v1990_v38 = vmul.f32 0.0051020407, %v1833_v60 }
 0x3d9   : > { %v2022_v26 = vmul.f32 %v1990_v38, %v1990_v38 }
 0x3da   : > { %v1865_v23 = vpop.xlane.xlu0 %1864  ;;  %v1837_v0 = vpop.xlane.xlu1 %1836 }
 0x3db   : > { %v4235_v36 = vmul.f32 0.0051020407, %v1865_v23  ;;  %v4237_v19 = vmul.f32 0.0051020407, %v1837_v0  ;;  %v4256_v23 = vld [vmem:[%s4251_s30] sm:$0xff] }
 0x3dd   : > { %v2030_v30 = vmul.f32 %v4235_v36, %v4235_v36  ;;  %v2023_v50 = vmul.f32 %v4237_v19, %v4237_v19 }
 0x3de   : > { %v1929_v56 = vpop.xlane.xlu0 %1928  ;;  %v1869_v24 = vpop.xlane.xlu1 %1868 }
 0x3df   : > { %v2006_v32 = vmul.f32 0.0051020407, %v1929_v56  ;;  %v4241_v1 = vmul.f32 0.0051020407, %v1869_v24 }
 0x3e1   : > { %v2038_v58 = vsub.f32 %v2006_v32, %v2022_v26  ;;  %v2031_v44 = vmul.f32 %v4241_v1, %v4241_v1 }
 0x3e2   : > { %v1961_v16 = vpop.xlane.xlu0 %1960  ;;  %v1933_v40 = vpop.xlane.xlu1 %1932 }
 0x3e3   : > { %v2070_v42 = vadd.f32 1e-05, %v2038_v58  ;;  %v2014_v4 = vmul.f32 0.0051020407, %v1961_v16  ;;  %v2007_v34 = vmul.f32 0.0051020407, %v1933_v40 }
 0x3e5   : > { %2752 = vrsqrt.f32 %v2070_v42  ;;  %v2046_v8 = vsub.f32 %v2014_v4, %v2030_v30  ;;  %v2039_v21 = vsub.f32 %v2007_v34, %v2023_v50  ;;  %v4266_v50 = vld [vmem:[%s4251_s30 + $0x40] sm:$0xff]  ;;  %v4269_v34 = vld [vmem:[%s4251_s30 + $0x8] sm:$0xff] }
 0x3e6   : > { %v1965_v20 = vpop.xlane.xlu1 %1964  ;;  %v1841_v3 = vpop.xlane.xlu0 %1840 }
 0x3e7   : > { %v2078_v13 = vadd.f32 1e-05, %v2046_v8  ;;  %v2071_v37 = vadd.f32 1e-05, %v2039_v21  ;;  %v2015_v62 = vmul.f32 0.0051020407, %v1965_v20 }
 0x3e8   : > { %v4253_v60 = vmul.f32 0.0051020407, %v1841_v3 }
 0x3e9   : > { %2754 = vrsqrt.f32 %v2078_v13  ;;  %v2047_v54 = vsub.f32 %v2015_v62, %v2031_v44 }
 0x3ea   : > { %2756 = vrsqrt.f32 %v2071_v37  ;;  %v1877_v17 = vpop.xlane.xlu1 %1876  ;;  %v1873_v10 = vpop.xlane.xlu0 %1872  ;;  %v2024_v26 = vmul.f32 %v4253_v60, %v4253_v60 }
 0x3eb   : > { %v2079_v35 = vadd.f32 1e-05, %v2047_v54  ;;  %v4260_v32 = vmul.f32 0.0051020407, %v1873_v10  ;;  %v4262_v30 = vmul.f32 0.0051020407, %v1877_v17 }
 0x3ed   : > { %2758 = vrsqrt.f32 %v2079_v35  ;;  %v2032_v21 = vmul.f32 %v4260_v32, %v4260_v32  ;;  %v2033_v37 = vmul.f32 %v4262_v30, %v4262_v30 }
 0x3ee   : > { %v1937_v0 = vpop.xlane.xlu0 %1936  ;;  %v1941_v56 = vpop.xlane.xlu1 %1940 }
 0x3ef   : > { %v2753_v24 = vpop.eup %2752  ;;  %v2008_v58 = vmul.f32 0.0051020407, %v1937_v0 }
 0x3f0   : > { %v2102_v16 = vmul.f32 %v2753_v24, %v4256_v23 }
 0x3f1   : > { %v2040_v40 = vsub.f32 %v2008_v58, %v2024_v26  ;;  %v4281_v26 = vld [vmem:[%s4251_s30 + $0x48] sm:$0xff] }
 0x3f2   : > { %v1969_v42 = vpop.xlane.xlu0 %1968  ;;  %v1973_v4 = vpop.xlane.xlu1 %1972  ;;  %2216 = vperm.xlu0 %2684, %v2102_v16   ;;  %v2118_v62 = vmul.f32 %v2102_v16, %v1990_v38  ;;  %v2009_v38 = vmul.f32 0.0051020407, %v1941_v56 }
 0x3f3   : > { %v2755_v8 = vpop.eup %2754  ;;  %v2072_v20 = vadd.f32 1e-05, %v2040_v40  ;;  %v2016_v3 = vmul.f32 0.0051020407, %v1969_v42  ;;  %v2017_v44 = vmul.f32 0.0051020407, %v1973_v4 }
 0x3f4   : > { %v2757_v13 = vpop.eup %2756  ;;  %v4276_v54 = vmul.f32 %v2755_v8, %v4266_v50 }
 0x3f5   : > { %2760 = vrsqrt.f32 %v2072_v20  ;;  %v2048_v17 = vsub.f32 %v2016_v3, %v2032_v21  ;;  %v2103_v10 = vmul.f32 %v2757_v13, %v4269_v34  ;;  %v2049_v35 = vsub.f32 %v2017_v44, %v2033_v37 }
 0x3f6   : > { %v1845_v0 = vpop.xlane.xlu0 %1844  ;;  %v1853_v24 = vpop.xlane.xlu1 %1852  ;;  %2150 = vrot.lane.b32.xlu0 %v2118_v62, %s2857_s29  ;;  %v2126_v16 = vmul.f32 %v4276_v54, %v4235_v36  ;;  %v4300_v62 = vld [vmem:[%s4251_s30 + $0x10] sm:$0xff] }
 0x3f7   : > { %v2759_v58 = vpop.eup %2758  ;;  %v2080_v40 = vadd.f32 1e-05, %v2048_v17  ;;  %v4283_v42 = vmul.f32 0.0051020407, %v1845_v0  ;;  %2221 = vperm.xlu1 %2685, %v2103_v10   ;;  %v2119_v8 = vmul.f32 %v2103_v10, %v4237_v19  ;;  %v2081_v20 = vadd.f32 1e-05, %v2049_v35 }
 0x3f8   : > { %v4291_v21 = vmul.f32 %v2759_v58, %v4281_v26  ;;  %v4294_v37 = vmul.f32 0.0051020407, %v1853_v24 }
 0x3f9   : > { %2762 = vrsqrt.f32 %v2080_v40  ;;  %v2025_v4 = vmul.f32 %v4283_v42, %v4283_v42 }
 0x3fa   : > { %v1849_v3 = vpop.xlane.xlu0 %1848  ;;  %v1885_v44 = vpop.xlane.xlu1 %1884  ;;  %2166 = vrot.lane.b32.xlu0 %v2126_v16, %s2857_s29  ;;  %v2127_v56 = vmul.f32 %v4291_v21, %v4241_v1  ;;  %2764 = vrsqrt.f32 %v2081_v20  ;;  %v2027_v0 = vmul.f32 %v4294_v37, %v4294_v37 }
 0x3fb   : > { %v2041_v13 = vsub.f32 %v2009_v38, %v2025_v4  ;;  %2152 = vrot.lane.b32.xlu1 %v2119_v8, %s2857_s29  ;;  %v4302_v19 = vmul.f32 0.0051020407, %v1849_v3  ;;  %v4306_v24 = vmul.f32 0.0051020407, %v1885_v44  ;;  %v4311_v38 = vld [vmem:[%s4251_s30 + $0x50] sm:$0xff] }
 0x3fd   : > { %v2073_v36 = vadd.f32 1e-05, %v2041_v13  ;;  %v2026_v16 = vmul.f32 %v4302_v19, %v4302_v19  ;;  %v2035_v44 = vmul.f32 %v4306_v24, %v4306_v24 }
 0x3fe   : > { %v1881_v17 = vpop.xlane.xlu0 %1880  ;;  %v1949_v10 = vpop.xlane.xlu1 %1948 }
 0x3ff   : > { %v2761_v35 = vpop.eup %2760  ;;  %2766 = vrsqrt.f32 %v2073_v36  ;;  %v2011_v58 = vmul.f32 0.0051020407, %v1949_v10  ;;  %2168 = vrot.lane.b32.xlu1 %v2127_v56, %s2857_s29  ;;  %v4315_v4 = vmul.f32 0.0051020407, %v1881_v17 }
 0x400   : > { %v2104_v40 = vmul.f32 %v2761_v35, %v4300_v62 }
 0x401   : > { %v2043_v1 = vsub.f32 %v2011_v58, %v2027_v0  ;;  %v4324_v58 = vld [vmem:[%s4251_s30 + $0x18] sm:$0xff] }
 0x402   : > { %v1945_v8 = vpop.xlane.xlu0 %1944  ;;  %v1981_v20 = vpop.xlane.xlu1 %1980  ;;  %v2120_v17 = vmul.f32 %v2104_v40, %v4253_v60 }
 0x403   : > { %v2763_v3 = vpop.eup %2762  ;;  %v2075_v13 = vadd.f32 1e-05, %v2043_v1  ;;  %v2010_v36 = vmul.f32 0.0051020407, %v1945_v8  ;;  %v2019_v56 = vmul.f32 0.0051020407, %v1981_v20  ;;  %2226 = vperm.xlu1 %2685, %v2104_v40   ;;  %v2034_v1 = vmul.f32 %v4315_v4, %v4315_v4 }
 0x404   : > { %v4320_v10 = vmul.f32 %v2763_v3, %v4311_v38 }
 0x405   : > { %2768 = vrsqrt.f32 %v2075_v13  ;;  %v2042_v35 = vsub.f32 %v2010_v36, %v2026_v16  ;;  %v2051_v0 = vsub.f32 %v2019_v56, %v2035_v44  ;;  %v2765_v16 = vpop.eup %2764  ;;  %v4333_v44 = vld [vmem:[%s4251_s30 + $0x58] sm:$0xff] }
 0x406   : > { %v1977_v28 = vpop.xlane.xlu0 %1976  ;;  %v1861_v49 = vpop.xlane.xlu1 %1860  ;;  %v2128_v57 = vmul.f32 %v4320_v10, %v4260_v32 }
 0x407   : > { %v2074_v8 = vadd.f32 1e-05, %v2042_v35  ;;  %v2083_v20 = vadd.f32 1e-05, %v2051_v0  ;;  %v2018_v3 = vmul.f32 0.0051020407, %v1977_v28  ;;  %2154 = vrot.lane.b32.xlu1 %v2120_v17, %s2857_s29  ;;  %v4341_v0 = vmul.f32 %v2765_v16, %v4333_v44 }
 0x408   : > { %2170 = vrot.lane.b32.xlu0 %v2128_v57, %s2857_s29  ;;  %v1997_v35 = vmul.f32 0.0051020407, %v1861_v49  ;;  %v4344_v57 = vld [vmem:[%s4251_s30 + $0x28] sm:$0xff] }
 0x409   : > { %v2767_v60 = vpop.eup %2766  ;;  %2770 = vrsqrt.f32 %v2074_v8  ;;  %v2050_v40 = vsub.f32 %v2018_v3, %v2034_v1 }
 0x40a   : > { %v4336_v13 = vmul.f32 %v2767_v60, %v4324_v58  ;;  %2772 = vrsqrt.f32 %v2083_v20  ;;  %v1857_v32 = vpop.xlane.xlu0 %1856  ;;  %v1893_v36 = vpop.xlane.xlu1 %1892  ;;  %v2029_v3 = vmul.f32 %v1997_v35, %v1997_v35 }
 0x40b   : > { %v2082_v56 = vadd.f32 1e-05, %v2050_v40  ;;  %v1996_v17 = vmul.f32 0.0051020407, %v1857_v32  ;;  %v2005_v60 = vmul.f32 0.0051020407, %v1893_v36  ;;  %v2129_v40 = vmul.f32 %v4341_v0, %v4262_v30 }
 0x40c   : > { %v2121_v28 = vmul.f32 %v4336_v13, %v4283_v42 }
 0x40d   : > { %2774 = vrsqrt.f32 %v2082_v56  ;;  %v4353_v56 = vld [vmem:[%s4251_s30 + $0x20] sm:$0xff]  ;;  %v2028_v7 = vmul.f32 %v1996_v17, %v1996_v17 }
 0x40e   : > { %v1889_v1 = vpop.xlane.xlu0 %1888  ;;  %2156 = vrot.lane.b32.xlu1 %v2121_v28, %s2857_s29  ;;  %v1957_v8 = vpop.xlane.xlu1 %1956 }
 0x40f   : > { %v2769_v20 = vpop.eup %2768  ;;  %v2013_v49 = vmul.f32 0.0051020407, %v1957_v8  ;;  %v2004_v32 = vmul.f32 0.0051020407, %v1889_v1  ;;  %v2037_v8 = vmul.f32 %v2005_v60, %v2005_v60 }
 0x410   : > { %v4350_v42 = vmul.f32 %v2769_v20, %v4344_v57 }
 0x411   : > { %v2045_v16 = vsub.f32 %v2013_v49, %v2029_v3 }
 0x412   : > { %v1953_v48 = vpop.xlane.xlu0 %1952  ;;  %2172 = vrot.lane.b32.xlu1 %v2129_v40, %s2857_s29  ;;  %v1989_v28 = vpop.xlane.xlu1 %1988  ;;  %v2123_v20 = vmul.f32 %v4350_v42, %v4294_v37  ;;  %v4364_v40 = vld [vmem:[%s4251_s30 + $0x60] sm:$0xff] }
 0x413   : > { %v2771_v36 = vpop.eup %2770  ;;  %v2077_v18 = vadd.f32 1e-05, %v2045_v16  ;;  %v2012_v53 = vmul.f32 0.0051020407, %v1953_v48  ;;  %v2021_v30 = vmul.f32 0.0051020407, %v1989_v28  ;;  %v2036_v28 = vmul.f32 %v2004_v32, %v2004_v32 }
 0x414   : > { %v2773_v9 = vpop.eup %2772  ;;  %v2106_v3 = vmul.f32 %v2771_v36, %v4353_v56 }
 0x415   : > { %2776 = vrsqrt.f32 %v2077_v18  ;;  %v2044_v1 = vsub.f32 %v2012_v53, %v2028_v7  ;;  %v2053_v49 = vsub.f32 %v2021_v30, %v2037_v8  ;;  %v2115_v27 = vmul.f32 %v2773_v9, %v4357_v2 }
 0x416   : > { %v1985_v55 = vpop.xlane.xlu0 %1984  ;;  %2160 = vrot.lane.b32.xlu1 %v2123_v20, %s2857_s29  ;;  %v2122_v16 = vmul.f32 %v2106_v3, %v4302_v19 }
 0x417   : > { %v2775_v48 = vpop.eup %2774  ;;  %v2076_v6 = vadd.f32 1e-05, %v2044_v1  ;;  %v2085_v61 = vadd.f32 1e-05, %v2053_v49  ;;  %v2020_v37 = vmul.f32 0.0051020407, %v1985_v55  ;;  %v2131_v18 = vmul.f32 %v2115_v27, %v4306_v24 }
 0x418   : > { %2158 = vrot.lane.b32.xlu0 %v2122_v16, %s2857_s29  ;;  %v2114_v9 = vmul.f32 %v2775_v48, %v4364_v40  ;;  %v4375_v55 = vld [vmem:[%s4251_s30 + $0x38] sm:$0xff]  ;;  %v4379_v24 = vld [vmem:[%s4251_s30 + $0x30] sm:$0xff] }
 0x419   : > { %2778 = vrsqrt.f32 %v2076_v6  ;;  %v2052_v53 = vsub.f32 %v2020_v37, %v2036_v28  ;;  %v4382_v6 = vld [vmem:[%s4251_s30 + $0x78] sm:$0xff]  ;;  %v4388_v49 = vld [vmem:[%s4251_s30 + $0x70] sm:$0xff] }
 0x41a   : > { %2780 = vrsqrt.f32 %v2085_v61  ;;  %2176 = vrot.lane.b32.xlu1 %v2131_v18, %s2857_s29  ;;  %v2130_v7 = vmul.f32 %v2114_v9, %v4315_v4 }
 0x41b   : > { %v2084_v19 = vadd.f32 1e-05, %v2052_v53 }
 0x41c   : > { %2174 = vrot.lane.b32.xlu0 %v2130_v7, %s2857_s29 }
 0x41d   : > { %2782 = vrsqrt.f32 %v2084_v19 }
 0x41f   : > { %v2777_v36 = vpop.eup %2776 }
 0x420   : > { %v2109_v8 = vmul.f32 %v2777_v36, %v4375_v55 }
 0x422   : > { %v2125_v30 = vmul.f32 %v2109_v8, %v1997_v35 }
 0x423   : > { %v2779_v61 = vpop.eup %2778 }
 0x424   : > { %v2781_v20 = vpop.eup %2780  ;;  %2164 = vrot.lane.b32.xlu1 %v2125_v30, %s2857_s29  ;;  %v2108_v4 = vmul.f32 %v2779_v61, %v4379_v24 }
 0x425   : > { %v2117_v1 = vmul.f32 %v2781_v20, %v4382_v6 }
 0x426   : > { %v2124_v16 = vmul.f32 %v2108_v4, %v1996_v17  ;;  %v4613_v17 = vmov 1  }
 0x427   : > { %v2783_v48 = vpop.eup %2782  ;;  %v2133_v28 = vmul.f32 %v2117_v1, %v2005_v60 }
 0x428   : > { %2162 = vrot.lane.b32.xlu0 %v2124_v16, %s2857_s29  ;;  %v2116_v37 = vmul.f32 %v2783_v48, %v4388_v49 }
 0x429   : > { %2180 = vrot.lane.b32.xlu1 %v2133_v28, %s2857_s29 }
 0x42a   : > { %v2132_v35 = vmul.f32 %v2116_v37, %v2004_v32 }
 0x42c   : > { %2178 = vrot.lane.b32.xlu0 %v2132_v35, %s2857_s29 }
 0x42d   : > { %2236 = vperm.xlu1 %2685, %v2106_v3  }
 0x430   : > { %2231 = vperm.xlu0 %2684, %v4336_v13  }
 0x431   : > { %2246 = vperm.xlu1 %2685, %v2108_v4  }
 0x434   : > { %2241 = vperm.xlu0 %2684, %v4350_v42  }
 0x435   : > { %2256 = vperm.xlu1 %2685, %v4276_v54  }
 0x438   : > { %2251 = vperm.xlu0 %2684, %v2109_v8  }
 0x439   : > { %2266 = vperm.xlu1 %2685, %v4320_v10  }
 0x43c   : > { %2261 = vperm.xlu0 %2684, %v4291_v21  }
 0x43d   : > { %2276 = vperm.xlu1 %2685, %v2114_v9  }
 0x440   : > { %2271 = vperm.xlu0 %2684, %v4341_v0  }
 0x441   : > { %2286 = vperm.xlu1 %2685, %v2116_v37  }
 0x444   : > { %2281 = vperm.xlu0 %2684, %v2115_v27  }
 0x445   : > { %2686 = vset.pattern.permute.xlu1 %v4613_v17 }
 0x448   : > { %2291 = vperm.xlu0 %2684, %v2117_v1  }
 0x44c   : > { %2687 = vset.pattern.permute.xlu0 %v4613_v17 }
 0x471   : > { %v4402_v13 = vpop.permute.xlu0 %2216 }
 0x472   : > { %v4406_v54 = vmul.f32 %v4402_v13, %v3995_v47 }
 0x475   : > { %v2151_v60 = vpop.permute.xlu0 %2150 }
 0x476   : > { %v2198_v10 = vsub.f32 %v4256_v23, %v2151_v60  ;;  %v4409_v21 = vpop.permute.xlu1 %2221 }
 0x477   : > { %v4413_v0 = vmul.f32 %v4409_v21, %v4003_v5 }
 0x478   : > { %2328 = vperm.xlu1 %2686, %v2198_v10  }
 0x479   : > { %v2167_v27 = vpop.permute.xlu0 %2166 }
 0x47a   : > { %v2206_v42 = vsub.f32 %v4266_v50, %v2167_v27  ;;  %v2153_v32 = vpop.permute.xlu1 %2152 }
 0x47b   : > { %v2199_v3 = vsub.f32 %v4269_v34, %v2153_v32 }
 0x47c   : > { %2368 = vperm.xlu0 %2687, %v2206_v42   ;;  %v2295_v42 = vmul.f32 %v4402_v13, %v4016_v46  ;;  %v2297_v46 = vmul.f32 %v4409_v21, %v4037_v14 }
 0x47d   : > { %v2171_v47 = vpop.permute.xlu0 %2170 }
 0x47e   : > { %v2169_v18 = vpop.permute.xlu1 %2168  ;;  %v2208_v23 = vsub.f32 %v4311_v38, %v2171_v47 }
 0x47f   : > { %v2207_v9 = vsub.f32 %v4281_v26, %v2169_v18 }
 0x480   : > { %2333 = vperm.xlu0 %2687, %v2199_v3  }
 0x481   : > { %2373 = vperm.xlu1 %2686, %v2207_v9  }
 0x482   : > { %v4419_v53 = vpop.permute.xlu1 %2226 }
 0x483   : > { %v4423_v5 = vmul.f32 %v4419_v53, %v4011_v22 }
 0x484   : > { %2378 = vperm.xlu0 %2687, %v2208_v23  }
 0x486   : > { %v2155_v50 = vpop.permute.xlu1 %2154 }
 0x487   : > { %v2200_v7 = vsub.f32 %v4300_v62, %v2155_v50 }
 0x489   : > { %2338 = vperm.xlu1 %2686, %v2200_v7  }
 0x48a   : > { %v2157_v34 = vpop.permute.xlu1 %2156  ;;  %v2159_v19 = vpop.permute.xlu0 %2158 }
 0x48b   : > { %v2201_v36 = vsub.f32 %v4324_v58, %v2157_v34  ;;  %v2202_v26 = vsub.f32 %v4353_v56, %v2159_v19 }
 0x48d   : > { %2343 = vperm.xlu1 %2686, %v2201_v36   ;;  %2348 = vperm.xlu0 %2687, %v2202_v26  }
 0x48e   : > { %v2173_v38 = vpop.permute.xlu1 %2172  ;;  %v2175_v8 = vpop.permute.xlu0 %2174 }
 0x48f   : > { %v2209_v30 = vsub.f32 %v4333_v44, %v2173_v38  ;;  %v2210_v22 = vsub.f32 %v4364_v40, %v2175_v8 }
 0x491   : > { %2383 = vperm.xlu1 %2686, %v2209_v30   ;;  %2388 = vperm.xlu0 %2687, %v2210_v22  }
 0x492   : > { %v2161_v61 = vpop.permute.xlu1 %2160 }
 0x493   : > { %v2203_v62 = vsub.f32 %v4344_v57, %v2161_v61 }
 0x495   : > { %2353 = vperm.xlu1 %2686, %v2203_v62  }
 0x496   : > { %v2177_v20 = vpop.permute.xlu1 %2176 }
 0x497   : > { %v2211_v4 = vsub.f32 %v4357_v2, %v2177_v20 }
 0x499   : > { %2393 = vperm.xlu1 %2686, %v2211_v4  }
 0x49a   : > { %v2165_v58 = vpop.permute.xlu1 %2164  ;;  %v2163_v56 = vpop.permute.xlu0 %2162 }
 0x49b   : > { %v2205_v1 = vsub.f32 %v4375_v55, %v2165_v58  ;;  %v2204_v16 = vsub.f32 %v4379_v24, %v2163_v56 }
 0x49d   : > { %2363 = vperm.xlu1 %2686, %v2205_v1   ;;  %2358 = vperm.xlu0 %2687, %v2204_v16  }
 0x49e   : > { %v2181_v44 = vpop.permute.xlu1 %2180  ;;  %v2179_v40 = vpop.permute.xlu0 %2178 }
 0x49f   : > { %v2213_v48 = vsub.f32 %v4382_v6, %v2181_v44  ;;  %v2212_v28 = vsub.f32 %v4388_v49, %v2179_v40 }
 0x4a1   : > { %2403 = vperm.xlu1 %2686, %v2213_v48   ;;  %2398 = vperm.xlu0 %2687, %v2212_v28   ;;  %v4614_v48 = vld [vmem:[#allocation11_spill] sm:$0xff]  ;;  %v4615_v28 = vld [vmem:[#allocation8_spill] sm:$0xff] }
 0x4ac   : > { %v2237_v37 = vpop.permute.xlu1 %2236 }
 0x4ad   : > { %v2302_v22 = vmul.f32 %v2237_v37, %v4057_v52  ;;  %v2303_v61 = vmul.f32 %v2237_v37, %v4152_v41 }
 0x4af   : > { %v2232_v57 = vpop.permute.xlu0 %2231 }
 0x4b0   : > { %v4438_v35 = vpop.permute.xlu1 %2246  ;;  %v2300_v62 = vmul.f32 %v2232_v57, %v4034_v63  ;;  %v2301_v20 = vmul.f32 %v2232_v57, %v4103_v33 }
 0x4b3   : > { %v4436_v2 = vpop.permute.xlu0 %2241 }
 0x4b4   : > { %v2257_v24 = vpop.permute.xlu1 %2256 }
 0x4b5   : > { %v2310_v9 = vmul.f32 %v2257_v24, %v3997_v11  ;;  %v2311_v23 = vmul.f32 %v2257_v24, %v4019_v51 }
 0x4b7   : > { %v4440_v55 = vpop.permute.xlu0 %2251 }
 0x4b8   : > { %v2267_v60 = vpop.permute.xlu1 %2266 }
 0x4b9   : > { %v2314_v8 = vmul.f32 %v2267_v60, %v4013_v12  ;;  %v2315_v14 = vmul.f32 %v2267_v60, %v4100_v29 }
 0x4bb   : > { %v2262_v17 = vpop.permute.xlu0 %2261 }
 0x4bc   : > { %v2277_v27 = vpop.permute.xlu1 %2276  ;;  %v2312_v11 = vmul.f32 %v2262_v17, %v4005_v15  ;;  %v2313_v51 = vmul.f32 %v2262_v17, %v4040_v39  ;;  %v4616_v17 = vld [vmem:[#allocation3_spill] sm:$0xff] }
 0x4bd   : > { %v2318_v52 = vmul.f32 %v2277_v27, %v4059_v31  ;;  %v2319_v41 = vmul.f32 %v2277_v27, %v4166_v45 }
 0x4bf   : > { %v2272_v10 = vpop.permute.xlu0 %2271 }
 0x4c0   : > { %v4444_v49 = vpop.permute.xlu1 %2286  ;;  %v2316_v63 = vmul.f32 %v2272_v10, %v4030_v43  ;;  %v2317_v33 = vmul.f32 %v2272_v10, %v4097_v59  ;;  %v2304_v43 = vmul.f32 %v4436_v2, %v4614_v48  ;;  %v2305_v59 = vmul.f32 %v4436_v2, %v4615_v28  ;;  %v4617_v10 = vld [vmem:[#allocation9_spill] sm:$0xff] }
 0x4c3   : > { %v4442_v6 = vpop.permute.xlu0 %2281 }
 0x4c4   : > { %v2320_v60 = vmul.f32 %v4442_v6, %v4616_v17  ;;  %v2321_v27 = vmul.f32 %v4442_v6, %v4617_v10 }
 0x4c7   : > { %v4448_v32 = vpop.permute.xlu0 %2291 }
 0x4f7   : > { %v2329_v3 = vpop.permute.xlu1 %2328 }
 0x4f8   : > { %v2406_v18 = vadd.f32 %v2329_v3, %v4406_v54  ;;  %v2407_v47 = vadd.f32 %v2329_v3, %v2295_v42 }
 0x4fa   : > { %2438 = vst [vmem:[%s3993_s26] sm:$0xff] %v2406_v18  ;;  %2439 = vst.msk [vmem:[%s3993_s26 + $0x8] sm:$0xff] %vm292_vm0, %v2407_v47  ;;  %v4618_v18 = vld [vmem:[#allocation4_spill] sm:$0xff] }
 0x4fb   : > { %v2369_v50 = vpop.permute.xlu0 %2368  ;;  %v2306_v47 = vmul.f32 %v4438_v35, %v4618_v18 }
 0x4fc   : > { %v2422_v7 = vadd.f32 %v2369_v50, %v2310_v9  ;;  %v2423_v34 = vadd.f32 %v2369_v50, %v2311_v23  ;;  %v4619_v9 = vld [vmem:[#allocation12_spill] sm:$0xff]  ;;  %v4620_v50 = vld [vmem:[#allocation6_spill] sm:$0xff] }
 0x4fd   : > { %v2307_v23 = vmul.f32 %v4438_v35, %v4619_v9  ;;  %v4622_v35 = vld [vmem:[#allocation2_spill] sm:$0xff] }
 0x4fe   : > { %2454 = vst [vmem:[%s3993_s26 + $0x80] sm:$0xff] %v2422_v7  ;;  %2455 = vst.msk [vmem:[%s3993_s26 + $0x88] sm:$0xff] %vm292_vm0, %v2423_v34  ;;  %v2308_v7 = vmul.f32 %v4440_v55, %v4620_v50  ;;  %v4621_v34 = vld [vmem:[#allocation7_spill] sm:$0xff] }
 0x4ff   : > { %v2334_v13 = vpop.permute.xlu0 %2333  ;;  %v2309_v6 = vmul.f32 %v4440_v55, %v4621_v34  ;;  %v4624_v55 = vld [vmem:[#allocation5_spill] sm:$0xff] }
 0x500   : > { %v2408_v54 = vadd.f32 %v2334_v13, %v4413_v0  ;;  %v2409_v19 = vadd.f32 %v2334_v13, %v2297_v46  ;;  %v2374_v36 = vpop.permute.xlu1 %2373  ;;  %v2299_v0 = vmul.f32 %v4419_v53, %v4081_v25 }
 0x501   : > { %v2424_v26 = vadd.f32 %v2374_v36, %v2312_v11  ;;  %v2425_v38 = vadd.f32 %v2374_v36, %v2313_v51  ;;  %v2322_v36 = vmul.f32 %v4444_v49, %v4622_v35 }
 0x502   : > { %2440 = vst [vmem:[%s3993_s26 + $0x10] sm:$0xff] %v2408_v54  ;;  %2441 = vst.msk [vmem:[%s3993_s26 + $0x18] sm:$0xff] %vm292_vm0, %v2409_v19 }
 0x503   : > { %2456 = vst [vmem:[%s3993_s26 + $0x90] sm:$0xff] %v2424_v26  ;;  %2457 = vst.msk [vmem:[%s3993_s26 + $0x98] sm:$0xff] %vm292_vm0, %v2425_v38  ;;  %v2379_v15 = vpop.permute.xlu0 %2378  ;;  %v4623_v26 = vld [vmem:[#allocation13_spill] sm:$0xff] }
 0x504   : > { %v2426_v39 = vadd.f32 %v2379_v15, %v2314_v8  ;;  %v2427_v21 = vadd.f32 %v2379_v15, %v2315_v14  ;;  %v2323_v38 = vmul.f32 %v4444_v49, %v4623_v26  ;;  %v2324_v8 = vmul.f32 %v4448_v32, %v4624_v55  ;;  %v4625_v14 = vld [vmem:[#allocation10_spill] sm:$0xff] }
 0x505   : > { %v2325_v15 = vmul.f32 %v4448_v32, %v4625_v14 }
 0x506   : > { %2458 = vst [vmem:[%s3993_s26 + $0xa0] sm:$0xff] %v2426_v39  ;;  %2459 = vst.msk [vmem:[%s3993_s26 + $0xa8] sm:$0xff] %vm292_vm0, %v2427_v21 }
 0x508   : > { %v2339_v12 = vpop.permute.xlu1 %2338 }
 0x509   : > { %v2410_v29 = vadd.f32 %v2339_v12, %v4423_v5  ;;  %v2411_v30 = vadd.f32 %v2339_v12, %v2299_v0 }
 0x50b   : > { %2442 = vst [vmem:[%s3993_s26 + $0x20] sm:$0xff] %v2410_v29  ;;  %2443 = vst.msk [vmem:[%s3993_s26 + $0x28] sm:$0xff] %vm292_vm0, %v2411_v30 }
 0x50c   : > { %v2344_v25 = vpop.permute.xlu1 %2343  ;;  %v2349_v53 = vpop.permute.xlu0 %2348 }
 0x50d   : > { %v2412_v4 = vadd.f32 %v2344_v25, %v2300_v62  ;;  %v2413_v5 = vadd.f32 %v2344_v25, %v2301_v20  ;;  %v2414_v58 = vadd.f32 %v2349_v53, %v2302_v22  ;;  %v2415_v56 = vadd.f32 %v2349_v53, %v2303_v61 }
 0x50f   : > { %2444 = vst [vmem:[%s3993_s26 + $0x30] sm:$0xff] %v2412_v4  ;;  %2445 = vst.msk [vmem:[%s3993_s26 + $0x38] sm:$0xff] %vm292_vm0, %v2413_v5 }
 0x510   : > { %2446 = vst [vmem:[%s3993_s26 + $0x40] sm:$0xff] %v2414_v58  ;;  %2447 = vst.msk [vmem:[%s3993_s26 + $0x48] sm:$0xff] %vm292_vm0, %v2415_v56  ;;  %v2384_v1 = vpop.permute.xlu1 %2383  ;;  %v2389_v16 = vpop.permute.xlu0 %2388 }
 0x511   : > { %v2428_v31 = vadd.f32 %v2384_v1, %v2316_v63  ;;  %v2429_v44 = vadd.f32 %v2384_v1, %v2317_v33  ;;  %v2430_v45 = vadd.f32 %v2389_v16, %v2318_v52  ;;  %v2431_v40 = vadd.f32 %v2389_v16, %v2319_v41 }
 0x513   : > { %2460 = vst [vmem:[%s3993_s26 + $0xb0] sm:$0xff] %v2428_v31  ;;  %2461 = vst.msk [vmem:[%s3993_s26 + $0xb8] sm:$0xff] %vm292_vm0, %v2429_v44 }
 0x514   : > { %2462 = vst [vmem:[%s3993_s26 + $0xc0] sm:$0xff] %v2430_v45  ;;  %2463 = vst.msk [vmem:[%s3993_s26 + $0xc8] sm:$0xff] %vm292_vm0, %v2431_v40  ;;  %v2354_v57 = vpop.permute.xlu1 %2353 }
 0x515   : > { %v2416_v37 = vadd.f32 %v2354_v57, %v2304_v43  ;;  %v2417_v24 = vadd.f32 %v2354_v57, %v2305_v59 }
 0x517   : > { %2448 = vst [vmem:[%s3993_s26 + $0x50] sm:$0xff] %v2416_v37  ;;  %2449 = vst.msk [vmem:[%s3993_s26 + $0x58] sm:$0xff] %vm292_vm0, %v2417_v24 }
 0x518   : > { %v2394_v2 = vpop.permute.xlu1 %2393 }
 0x519   : > { %v2432_v42 = vadd.f32 %v2394_v2, %v2320_v60  ;;  %v2433_v3 = vadd.f32 %v2394_v2, %v2321_v27 }
 0x51b   : > { %2464 = vst [vmem:[%s3993_s26 + $0xd0] sm:$0xff] %v2432_v42  ;;  %2465 = vst.msk [vmem:[%s3993_s26 + $0xd8] sm:$0xff] %vm292_vm0, %v2433_v3 }
 0x51c   : > { %v2364_v46 = vpop.permute.xlu1 %2363  ;;  %v2359_v11 = vpop.permute.xlu0 %2358 }
 0x51d   : > { %v2420_v51 = vadd.f32 %v2364_v46, %v2308_v7  ;;  %v2421_v13 = vadd.f32 %v2364_v46, %v2309_v6  ;;  %v2418_v54 = vadd.f32 %v2359_v11, %v2306_v47  ;;  %v2419_v19 = vadd.f32 %v2359_v11, %v2307_v23 }
 0x51f   : > { %2452 = vst [vmem:[%s3993_s26 + $0x70] sm:$0xff] %v2420_v51  ;;  %2453 = vst.msk [vmem:[%s3993_s26 + $0x78] sm:$0xff] %vm292_vm0, %v2421_v13 }
 0x520   : > { %2450 = vst [vmem:[%s3993_s26 + $0x60] sm:$0xff] %v2418_v54  ;;  %2451 = vst.msk [vmem:[%s3993_s26 + $0x68] sm:$0xff] %vm292_vm0, %v2419_v19  ;;  %v2404_v39 = vpop.permute.xlu1 %2403  ;;  %v2399_v21 = vpop.permute.xlu0 %2398 }
 0x521   : > { %v2436_v0 = vadd.f32 %v2404_v39, %v2324_v8  ;;  %v2437_v12 = vadd.f32 %v2404_v39, %v2325_v15  ;;  %v2434_v29 = vadd.f32 %v2399_v21, %v2322_v36  ;;  %v2435_v30 = vadd.f32 %v2399_v21, %v2323_v38 }
 0x523   : > { %2468 = vst [vmem:[%s3993_s26 + $0xf0] sm:$0xff] %v2436_v0  ;;  %2469 = vst.msk [vmem:[%s3993_s26 + $0xf8] sm:$0xff] %vm292_vm0, %v2437_v12 }
 0x524   : > { %2466 = vst [vmem:[%s3993_s26 + $0xe0] sm:$0xff] %v2434_v29  ;;  %2467 = vst.msk [vmem:[%s3993_s26 + $0xe8] sm:$0xff] %vm292_vm0, %v2435_v30 }
 0x525 PF: > { %s14_s15 = sadd.s32 1, %s2854_s15  }
 0x526   : > { %p11_p4 = scmp.ge.s32.totalorder %s14_s15, 10  }
 0x528   :  { %13 = sbr.rel (!%p11_p4) target bundleno = 1 (0x1), region = 69 }

</bundles_post_ra>
